<compile_context>
chip_gen: v5e
topology: v5e:2x2
jax: 0.10.0
libtpu: 0.0.40
codegen_flags: <defaults>
</compile_context>

<pallas_src>
import functools

import jax
import jax.numpy as jnp
import numpy as np
from jax.experimental import pallas as pl
from jax.experimental.pallas import tpu as pltpu


def _topk_merge_kernel(x_ref, vals_ref, idx_ref, topv_ref, topi_ref, *,
                       k, largest, chunk_n):
    """Merge one (chunk_n, TB) slab into the running top-k held in scratch."""
    j = pl.program_id(1)
    n_chunks = pl.num_programs(1)
    cdt = topv_ref.dtype

    minus_inf = jnp.asarray(-jnp.inf, dtype=cdt)
    big_idx = jnp.int32(2 ** 30)

    @pl.when(j == 0)
    def _init():
        topv_ref[...] = jnp.full(topv_ref.shape, minus_inf, dtype=cdt)
        topi_ref[...] = jnp.full(topi_ref.shape, big_idx, dtype=jnp.int32)

    work = x_ref[...]                                   # (chunk_n, TB)
    if not largest:
        work = -work                                    # min-selection -> max-selection
    gidx = jax.lax.broadcasted_iota(jnp.int32, work.shape, 0) + j * chunk_n

    tv = topv_ref[...]                                  # (k, TB) running values (negated if smallest)
    ti = topi_ref[...]                                  # (k, TB) running indices
    wv = work
    wi = gidx

    new_v, new_i = [], []
    # k is small and static -> fully unrolled selection over the
    # (running-topk + chunk) set; all reductions are over sublanes.
    for _ in range(k):
        m = jnp.maximum(jnp.max(tv, axis=0, keepdims=True),
                        jnp.max(wv, axis=0, keepdims=True))               # (1, TB)
        it = jnp.min(jnp.where(tv == m, ti, big_idx), axis=0, keepdims=True)
        iw = jnp.min(jnp.where(wv == m, wi, big_idx), axis=0, keepdims=True)
        sel = jnp.minimum(it, iw)                       # first occurrence wins on ties
        new_v.append(m)
        new_i.append(sel)
        # knock out exactly the selected element (indices are unique across both sets)
        tv = jnp.where(ti == sel, minus_inf, tv)
        wv = jnp.where(wi == sel, minus_inf, wv)

    tv_new = jnp.concatenate(new_v, axis=0)             # (k, TB), sorted descending
    ti_new = jnp.concatenate(new_i, axis=0)
    topv_ref[...] = tv_new
    topi_ref[...] = ti_new

    @pl.when(j == n_chunks - 1)
    def _finalize():
        out_v = tv_new if largest else -tv_new
        vals_ref[...] = out_v.astype(vals_ref.dtype)
        idx_ref[...] = ti_new


def _round_up(a, b):
    return ((a + b - 1) // b) * b


def topk_pallas(x, k, dim, largest=True, return_sorted=True, *,
                row_tile=512, chunk_n=256):
    """torch.topk(x, k, dim, largest, sorted) -> (values, indices)."""
    # Results are always emitted in sorted order, which is also valid for
    # sorted=False (torch leaves the order unspecified in that case).
    del return_sorted

    ndim = x.ndim
    dim = dim % ndim
    n = x.shape[dim]
    if not (1 <= k <= n):
        raise ValueError(f"k={k} must be in [1, {n}] for dim of size {n}")

    orig_dtype = x.dtype
    if jnp.issubdtype(orig_dtype, jnp.floating):
        compute_dtype = orig_dtype                       # bf16 stays native on v6e/v7x
    else:
        compute_dtype = jnp.float32                      # TODO(synk): precision above 2**24

    # Put the reduction axis first (-> sublanes), flatten the rest into lane rows.
    x2 = jnp.moveaxis(x, dim, 0)
    rest_shape = x2.shape[1:]
    rows = int(np.prod(rest_shape)) if rest_shape else 1
    xf = x2.reshape(n, rows).astype(compute_dtype)

    # Lane tile: multiple of 128, capped to what the batch rows actually need
    # (never one giant block, never huge padding for tiny batches).
    tb = min(row_tile, _round_up(rows, 128))
    tb = max(128, _round_up(tb, 128))
    rows_pad = _round_up(rows, tb)

    # Reduction-axis chunk: multiple of the sublane packing for the compute
    # dtype, capped to the (rounded) reduction length to avoid padding waste.
    itemsize = int(jnp.dtype(compute_dtype).itemsize)
    pack = max(8, 32 // itemsize)                        # f32->8, bf16->16, int8->32
    chunk = min(chunk_n, _round_up(n, pack))
    chunk = max(pack, _round_up(chunk, pack))
    n_pad = _round_up(n, chunk)

    fill = float("-inf") if largest else float("inf")    # padding never gets selected
    if rows_pad != rows or n_pad != n:
        xf = jnp.pad(xf, ((0, n_pad - n), (0, rows_pad - rows)),
                     constant_values=fill)

    grid = (rows_pad // tb, n_pad // chunk)

    kernel = functools.partial(_topk_merge_kernel, k=k, largest=largest,
                               chunk_n=chunk)

    out_itemsize = int(jnp.dtype(orig_dtype).itemsize)
    cost = pl.CostEstimate(
        flops=5 * k * n_pad * rows_pad,
        transcendentals=0,
        bytes_accessed=n_pad * rows_pad * itemsize
        + k * rows_pad * (out_itemsize + 4),
    )

    vals, idxs = pl.pallas_call(
        kernel,
        out_shape=(
            jax.ShapeDtypeStruct((k, rows_pad), orig_dtype),
            jax.ShapeDtypeStruct((k, rows_pad), jnp.int32),
        ),
        grid_spec=pltpu.PrefetchScalarGridSpec(
            num_scalar_prefetch=0,
            grid=grid,
            in_specs=[pl.BlockSpec((chunk, tb), lambda i, j: (j, i))],
            out_specs=[
                pl.BlockSpec((k, tb), lambda i, j: (0, i)),
                pl.BlockSpec((k, tb), lambda i, j: (0, i)),
            ],
            scratch_shapes=[
                pltpu.VMEM((k, tb), compute_dtype),       # running top-k values
                pltpu.VMEM((k, tb), jnp.int32),           # running top-k indices
            ],
        ),
        compiler_params=pltpu.CompilerParams(
            dimension_semantics=("parallel", "arbitrary"),
        ),
        cost_estimate=cost,
    )(xf)

    vals = vals[:, :rows].reshape((k,) + rest_shape)
    idxs = idxs[:, :rows].reshape((k,) + rest_shape)
    vals = jnp.moveaxis(vals, 0, dim)
    idxs = jnp.moveaxis(idxs, 0, dim)
    return vals, idxs


if __name__ == "__main__":
    # Module config (deterministic, in-script): TopK(k=4, dim=1, largest=True, return_sorted=True)
    K, DIM, LARGEST, SORTED = 4, 1, True, True

    key = jax.random.PRNGKey(0)
    x = jax.random.normal(key, (8, 256), dtype=jnp.float32)   # (batch_rows, features)

    vals, idxs = topk_pallas(x, K, DIM, LARGEST, SORTED)
    vals, idxs = jax.block_until_ready((vals, idxs))

    # Reference: lax.top_k has the same semantics as torch.topk(largest=True, sorted=True).
    ref_v, ref_i = jax.lax.top_k(x, K)
    np.testing.assert_allclose(np.asarray(vals), np.asarray(ref_v), rtol=0, atol=0)
    np.testing.assert_array_equal(np.asarray(idxs), np.asarray(ref_i))

    # largest=False path.
    sv, si = topk_pallas(x, K, DIM, largest=False)
    sv, si = jax.block_until_ready((sv, si))
    np.testing.assert_allclose(np.asarray(sv),
                               -np.asarray(jax.lax.top_k(-x, K)[0]), rtol=0, atol=0)
    np.testing.assert_array_equal(np.asarray(si), np.asarray(jax.lax.top_k(-x, K)[1]))

    # Non-last-dim / multi-axis sanity check (dim=0).
    y = jax.random.normal(jax.random.PRNGKey(1), (64, 2, 3), dtype=jnp.float32)
    yv, yi = topk_pallas(y, 5, 0, True, True)
    yv, yi = jax.block_until_ready((yv, yi))
    ry_v, ry_i = jax.lax.top_k(jnp.moveaxis(y, 0, -1), 5)
    np.testing.assert_allclose(np.asarray(yv),
                               np.asarray(jnp.moveaxis(ry_v, -1, 0)), rtol=0, atol=0)
    np.testing.assert_array_equal(np.asarray(yi),
                                  np.asarray(jnp.moveaxis(ry_i, -1, 0)))

    print("KERNEL_OK")
</pallas_src>

<mosaic_0001>
module attributes {stable_mosaic.version = 11 : i64} {
  func.func @_topk_merge_kernel(%arg0: i32, %arg1: i32, %arg2: memref<256x128xf32, #tpu.memory_space<vmem>>, %arg3: memref<4x128xf32, #tpu.memory_space<vmem>>, %arg4: memref<4x128xi32, #tpu.memory_space<vmem>>, %arg5: memref<4x128xf32, #tpu.memory_space<vmem>>, %arg6: memref<4x128xi32, #tpu.memory_space<vmem>>) attributes {dimension_semantics = [#tpu.dimension_semantics<parallel>, #tpu.dimension_semantics<arbitrary>], iteration_bounds = array<i64: 1, 1>, scalar_prefetch = 0 : i64, scratch_operands = 2 : i64, tpu.core_type = #tpu.core_type<tc>, window_params = [{transform_indices = @transform_0, window_bounds = array<i64: 256, 128>}, {transform_indices = @transform_1, window_bounds = array<i64: 4, 128>}, {transform_indices = @transform_2, window_bounds = array<i64: 4, 128>}]} {
    %c0_i32 = arith.constant 0 : i32
    %0 = arith.cmpi eq, %arg1, %c0_i32 : i32
    %1 = arith.extui %0 : i1 to i32
    %cst = arith.constant 0xFF800000 : f32
    %c1073741824_i32 = arith.constant 1073741824 : i32
    %c0_i32_0 = arith.constant 0 : i32
    %2 = arith.cmpi ne, %1, %c0_i32_0 : i32
    scf.if %2 {
      %113 = vector.broadcast %cst : f32 to vector<4x128xf32>
      %c0_42 = arith.constant 0 : index
      %c0_43 = arith.constant 0 : index
      %114 = vector.load %arg5[%c0_42, %c0_43] : memref<4x128xf32, #tpu.memory_space<vmem>>, vector<4x128xf32>
      tpu.vector_store %arg5[%c0_42, %c0_43], %113 {strides = array<i32>} : memref<4x128xf32, #tpu.memory_space<vmem>>, vector<4x128xf32>,
      %115 = vector.broadcast %c1073741824_i32 : i32 to vector<4x128xi32>
      %c0_44 = arith.constant 0 : index
      %c0_45 = arith.constant 0 : index
      %116 = vector.load %arg6[%c0_44, %c0_45] : memref<4x128xi32, #tpu.memory_space<vmem>>, vector<4x128xi32>
      tpu.vector_store %arg6[%c0_44, %c0_45], %115 {strides = array<i32>} : memref<4x128xi32, #tpu.memory_space<vmem>>, vector<4x128xi32>,
    } else {
    }
    %c0 = arith.constant 0 : index
    %c0_1 = arith.constant 0 : index
    %3 = vector.load %arg2[%c0, %c0_1] : memref<256x128xf32, #tpu.memory_space<vmem>>, vector<256x128xf32>
    %4 = tpu.iota {dimensions = array<i32: 0>} : vector<256x128xi32>
    %c256_i32 = arith.constant 256 : i32
    %5 = arith.muli %arg1, %c256_i32 : i32
    %6 = vector.broadcast %5 : i32 to vector<256x128xi32>
    %7 = arith.addi %4, %6 : vector<256x128xi32>
    %c0_2 = arith.constant 0 : index
    %c0_3 = arith.constant 0 : index
    %8 = vector.load %arg5[%c0_2, %c0_3] : memref<4x128xf32, #tpu.memory_space<vmem>>, vector<4x128xf32>
    %c0_4 = arith.constant 0 : index
    %c0_5 = arith.constant 0 : index
    %9 = vector.load %arg6[%c0_4, %c0_5] : memref<4x128xi32, #tpu.memory_space<vmem>>, vector<4x128xi32>
    %cst_6 = arith.constant dense<0xFF800000> : vector<128xf32>
    %10 = vector.multi_reduction <maximumf>, %8, %cst_6 [0] : vector<4x128xf32> to vector<128xf32>
    %11 = vector.shape_cast %10 : vector<128xf32> to vector<1x128xf32>
    %cst_7 = arith.constant dense<0xFF800000> : vector<128xf32>
    %12 = vector.multi_reduction <maximumf>, %3, %cst_7 [0] : vector<256x128xf32> to vector<128xf32>
    %13 = vector.shape_cast %12 : vector<128xf32> to vector<1x128xf32>
    %14 = arith.maximumf %11, %13 : vector<1x128xf32>
    %15 = vector.broadcast %14 : vector<1x128xf32> to vector<4x128xf32>
    %16 = arith.cmpf oeq, %8, %15 : vector<4x128xf32>
    %c1073741824_i32_8 = arith.constant 1073741824 : i32
    %17 = vector.broadcast %c1073741824_i32_8 : i32 to vector<4x128xi32>
    %18 = arith.select %16, %9, %17 : vector<4x128xi1>, vector<4x128xi32>
    %cst_9 = arith.constant dense<2147483647> : vector<128xi32>
    %19 = vector.multi_reduction <minsi>, %18, %cst_9 [0] : vector<4x128xi32> to vector<128xi32>
    %20 = vector.shape_cast %19 : vector<128xi32> to vector<1x128xi32>
    %21 = vector.broadcast %14 : vector<1x128xf32> to vector<256x128xf32>
    %22 = arith.cmpf oeq, %3, %21 : vector<256x128xf32>
    %c1073741824_i32_10 = arith.constant 1073741824 : i32
    %23 = vector.broadcast %c1073741824_i32_10 : i32 to vector<256x128xi32>
    %24 = arith.select %22, %7, %23 : vector<256x128xi1>, vector<256x128xi32>
    %cst_11 = arith.constant dense<2147483647> : vector<128xi32>
    %25 = vector.multi_reduction <minsi>, %24, %cst_11 [0] : vector<256x128xi32> to vector<128xi32>
    %26 = vector.shape_cast %25 : vector<128xi32> to vector<1x128xi32>
    %27 = arith.minsi %20, %26 : vector<1x128xi32>
    %28 = vector.broadcast %27 : vector<1x128xi32> to vector<4x128xi32>
    %29 = arith.cmpi eq, %9, %28 : vector<4x128xi32>
    %cst_12 = arith.constant 0xFF800000 : f32
    %30 = vector.broadcast %cst_12 : f32 to vector<4x128xf32>
    %31 = arith.select %29, %30, %8 : vector<4x128xi1>, vector<4x128xf32>
    %32 = vector.broadcast %27 : vector<1x128xi32> to vector<256x128xi32>
    %33 = arith.cmpi eq, %7, %32 : vector<256x128xi32>
    %cst_13 = arith.constant 0xFF800000 : f32
    %34 = vector.broadcast %cst_13 : f32 to vector<256x128xf32>
    %35 = arith.select %33, %34, %3 : vector<256x128xi1>, vector<256x128xf32>
    %cst_14 = arith.constant dense<0xFF800000> : vector<128xf32>
    %36 = vector.multi_reduction <maximumf>, %31, %cst_14 [0] : vector<4x128xf32> to vector<128xf32>
    %37 = vector.shape_cast %36 : vector<128xf32> to vector<1x128xf32>
    %cst_15 = arith.constant dense<0xFF800000> : vector<128xf32>
    %38 = vector.multi_reduction <maximumf>, %35, %cst_15 [0] : vector<256x128xf32> to vector<128xf32>
    %39 = vector.shape_cast %38 : vector<128xf32> to vector<1x128xf32>
    %40 = arith.maximumf %37, %39 : vector<1x128xf32>
    %41 = vector.broadcast %40 : vector<1x128xf32> to vector<4x128xf32>
    %42 = arith.cmpf oeq, %31, %41 : vector<4x128xf32>
    %c1073741824_i32_16 = arith.constant 1073741824 : i32
    %43 = vector.broadcast %c1073741824_i32_16 : i32 to vector<4x128xi32>
    %44 = arith.select %42, %9, %43 : vector<4x128xi1>, vector<4x128xi32>
    %cst_17 = arith.constant dense<2147483647> : vector<128xi32>
    %45 = vector.multi_reduction <minsi>, %44, %cst_17 [0] : vector<4x128xi32> to vector<128xi32>
    %46 = vector.shape_cast %45 : vector<128xi32> to vector<1x128xi32>
    %47 = vector.broadcast %40 : vector<1x128xf32> to vector<256x128xf32>
    %48 = arith.cmpf oeq, %35, %47 : vector<256x128xf32>
    %c1073741824_i32_18 = arith.constant 1073741824 : i32
    %49 = vector.broadcast %c1073741824_i32_18 : i32 to vector<256x128xi32>
    %50 = arith.select %48, %7, %49 : vector<256x128xi1>, vector<256x128xi32>
    %cst_19 = arith.constant dense<2147483647> : vector<128xi32>
    %51 = vector.multi_reduction <minsi>, %50, %cst_19 [0] : vector<256x128xi32> to vector<128xi32>
    %52 = vector.shape_cast %51 : vector<128xi32> to vector<1x128xi32>
    %53 = arith.minsi %46, %52 : vector<1x128xi32>
    %54 = vector.broadcast %53 : vector<1x128xi32> to vector<4x128xi32>
    %55 = arith.cmpi eq, %9, %54 : vector<4x128xi32>
    %cst_20 = arith.constant 0xFF800000 : f32
    %56 = vector.broadcast %cst_20 : f32 to vector<4x128xf32>
    %57 = arith.select %55, %56, %31 : vector<4x128xi1>, vector<4x128xf32>
    %58 = vector.broadcast %53 : vector<1x128xi32> to vector<256x128xi32>
    %59 = arith.cmpi eq, %7, %58 : vector<256x128xi32>
    %cst_21 = arith.constant 0xFF800000 : f32
    %60 = vector.broadcast %cst_21 : f32 to vector<256x128xf32>
    %61 = arith.select %59, %60, %35 : vector<256x128xi1>, vector<256x128xf32>
    %cst_22 = arith.constant dense<0xFF800000> : vector<128xf32>
    %62 = vector.multi_reduction <maximumf>, %57, %cst_22 [0] : vector<4x128xf32> to vector<128xf32>
    %63 = vector.shape_cast %62 : vector<128xf32> to vector<1x128xf32>
    %cst_23 = arith.constant dense<0xFF800000> : vector<128xf32>
    %64 = vector.multi_reduction <maximumf>, %61, %cst_23 [0] : vector<256x128xf32> to vector<128xf32>
    %65 = vector.shape_cast %64 : vector<128xf32> to vector<1x128xf32>
    %66 = arith.maximumf %63, %65 : vector<1x128xf32>
    %67 = vector.broadcast %66 : vector<1x128xf32> to vector<4x128xf32>
    %68 = arith.cmpf oeq, %57, %67 : vector<4x128xf32>
    %c1073741824_i32_24 = arith.constant 1073741824 : i32
    %69 = vector.broadcast %c1073741824_i32_24 : i32 to vector<4x128xi32>
    %70 = arith.select %68, %9, %69 : vector<4x128xi1>, vector<4x128xi32>
    %cst_25 = arith.constant dense<2147483647> : vector<128xi32>
    %71 = vector.multi_reduction <minsi>, %70, %cst_25 [0] : vector<4x128xi32> to vector<128xi32>
    %72 = vector.shape_cast %71 : vector<128xi32> to vector<1x128xi32>
    %73 = vector.broadcast %66 : vector<1x128xf32> to vector<256x128xf32>
    %74 = arith.cmpf oeq, %61, %73 : vector<256x128xf32>
    %c1073741824_i32_26 = arith.constant 1073741824 : i32
    %75 = vector.broadcast %c1073741824_i32_26 : i32 to vector<256x128xi32>
    %76 = arith.select %74, %7, %75 : vector<256x128xi1>, vector<256x128xi32>
    %cst_27 = arith.constant dense<2147483647> : vector<128xi32>
    %77 = vector.multi_reduction <minsi>, %76, %cst_27 [0] : vector<256x128xi32> to vector<128xi32>
    %78 = vector.shape_cast %77 : vector<128xi32> to vector<1x128xi32>
    %79 = arith.minsi %72, %78 : vector<1x128xi32>
    %80 = vector.broadcast %79 : vector<1x128xi32> to vector<4x128xi32>
    %81 = arith.cmpi eq, %9, %80 : vector<4x128xi32>
    %cst_28 = arith.constant 0xFF800000 : f32
    %82 = vector.broadcast %cst_28 : f32 to vector<4x128xf32>
    %83 = arith.select %81, %82, %57 : vector<4x128xi1>, vector<4x128xf32>
    %84 = vector.broadcast %79 : vector<1x128xi32> to vector<256x128xi32>
    %85 = arith.cmpi eq, %7, %84 : vector<256x128xi32>
    %cst_29 = arith.constant 0xFF800000 : f32
    %86 = vector.broadcast %cst_29 : f32 to vector<256x128xf32>
    %87 = arith.select %85, %86, %61 : vector<256x128xi1>, vector<256x128xf32>
    %cst_30 = arith.constant dense<0xFF800000> : vector<128xf32>
    %88 = vector.multi_reduction <maximumf>, %83, %cst_30 [0] : vector<4x128xf32> to vector<128xf32>
    %89 = vector.shape_cast %88 : vector<128xf32> to vector<1x128xf32>
    %cst_31 = arith.constant dense<0xFF800000> : vector<128xf32>
    %90 = vector.multi_reduction <maximumf>, %87, %cst_31 [0] : vector<256x128xf32> to vector<128xf32>
    %91 = vector.shape_cast %90 : vector<128xf32> to vector<1x128xf32>
    %92 = arith.maximumf %89, %91 : vector<1x128xf32>
    %93 = vector.broadcast %92 : vector<1x128xf32> to vector<4x128xf32>
    %94 = arith.cmpf oeq, %83, %93 : vector<4x128xf32>
    %c1073741824_i32_32 = arith.constant 1073741824 : i32
    %95 = vector.broadcast %c1073741824_i32_32 : i32 to vector<4x128xi32>
    %96 = arith.select %94, %9, %95 : vector<4x128xi1>, vector<4x128xi32>
    %cst_33 = arith.constant dense<2147483647> : vector<128xi32>
    %97 = vector.multi_reduction <minsi>, %96, %cst_33 [0] : vector<4x128xi32> to vector<128xi32>
    %98 = vector.shape_cast %97 : vector<128xi32> to vector<1x128xi32>
    %99 = vector.broadcast %92 : vector<1x128xf32> to vector<256x128xf32>
    %100 = arith.cmpf oeq, %87, %99 : vector<256x128xf32>
    %c1073741824_i32_34 = arith.constant 1073741824 : i32
    %101 = vector.broadcast %c1073741824_i32_34 : i32 to vector<256x128xi32>
    %102 = arith.select %100, %7, %101 : vector<256x128xi1>, vector<256x128xi32>
    %cst_35 = arith.constant dense<2147483647> : vector<128xi32>
    %103 = vector.multi_reduction <minsi>, %102, %cst_35 [0] : vector<256x128xi32> to vector<128xi32>
    %104 = vector.shape_cast %103 : vector<128xi32> to vector<1x128xi32>
    %105 = arith.minsi %98, %104 : vector<1x128xi32>
    %106 = tpu.concatenate %14, %40, %66, %92 in 0 : vector<1x128xf32>, vector<1x128xf32>, vector<1x128xf32>, vector<1x128xf32> -> vector<4x128xf32>
    %107 = tpu.concatenate %27, %53, %79, %105 in 0 : vector<1x128xi32>, vector<1x128xi32>, vector<1x128xi32>, vector<1x128xi32> -> vector<4x128xi32>
    %c0_36 = arith.constant 0 : index
    %c0_37 = arith.constant 0 : index
    %108 = vector.load %arg5[%c0_36, %c0_37] : memref<4x128xf32, #tpu.memory_space<vmem>>, vector<4x128xf32>
    tpu.vector_store %arg5[%c0_36, %c0_37], %106 {strides = array<i32>} : memref<4x128xf32, #tpu.memory_space<vmem>>, vector<4x128xf32>,
    %c0_38 = arith.constant 0 : index
    %c0_39 = arith.constant 0 : index
    %109 = vector.load %arg6[%c0_38, %c0_39] : memref<4x128xi32, #tpu.memory_space<vmem>>, vector<4x128xi32>
    tpu.vector_store %arg6[%c0_38, %c0_39], %107 {strides = array<i32>} : memref<4x128xi32, #tpu.memory_space<vmem>>, vector<4x128xi32>,
    %c0_i32_40 = arith.constant 0 : i32
    %110 = arith.cmpi eq, %arg1, %c0_i32_40 : i32
    %111 = arith.extui %110 : i1 to i32
    %c0_i32_41 = arith.constant 0 : i32
    %112 = arith.cmpi ne, %111, %c0_i32_41 : i32
    scf.if %112 {
      %c0_42 = arith.constant 0 : index
      %c0_43 = arith.constant 0 : index
      %113 = vector.load %arg3[%c0_42, %c0_43] : memref<4x128xf32, #tpu.memory_space<vmem>>, vector<4x128xf32>
      tpu.vector_store %arg3[%c0_42, %c0_43], %106 {strides = array<i32>} : memref<4x128xf32, #tpu.memory_space<vmem>>, vector<4x128xf32>,
      %c0_44 = arith.constant 0 : index
      %c0_45 = arith.constant 0 : index
      %114 = vector.load %arg4[%c0_44, %c0_45] : memref<4x128xi32, #tpu.memory_space<vmem>>, vector<4x128xi32>
      tpu.vector_store %arg4[%c0_44, %c0_45], %107 {strides = array<i32>} : memref<4x128xi32, #tpu.memory_space<vmem>>, vector<4x128xi32>,
    } else {
    }
    return
  }
  func.func @transform_0(%arg0: i32, %arg1: i32) -> (i32, i32) {
    %c0_i32 = arith.constant 0 : i32
    return %arg1, %arg0 : i32, i32
  }
  func.func @transform_1(%arg0: i32, %arg1: i32) -> (i32, i32) {
    %c0_i32 = arith.constant 0 : i32
    %c0_i32_0 = arith.constant 0 : i32
    return %c0_i32, %arg0 : i32, i32
  }
  func.func @transform_2(%arg0: i32, %arg1: i32) -> (i32, i32) {
    %c0_i32 = arith.constant 0 : i32
    %c0_i32_0 = arith.constant 0 : i32
    return %c0_i32, %arg0 : i32, i32
  }
}

</mosaic_0001>

<bundles_post_ra>
// kernel: tpu_custom_call.1
= control target key start
LH: loop header
LB: loop body
LE: loop exit
PB: predicated region body
PF: predicated region fallthrough
CT: control target
= control target key end

     0   :  { %8 = vsyncpa [#allocation5], 0  ;;  %s3213_s0 = inlined_call_operand.hbm [shape: f32[256,128], index: 0, kind: input, shape index: {}]   ;;  %s3214_s1 = inlined_call_operand.hbm [shape: f32[4,128], index: 1, kind: output, shape index: {0}]   ;;  %s3215_s2 = inlined_call_operand.hbm [shape: s32[4,128], index: 2, kind: output, shape index: {1}]  }
   0x1   :  { %9 = vsyncpa [#allocation6], 0 }
   0x2   :  { %10 = vsyncpa [#allocation9], 0  ;;  %s15_s11 = sshll.u32 %s3213_s0, 4  ;;  %s1245_s12 = smov [#allocation4]   ;;  %s16_s11 = int_to_ptr.hbm [resolvable:$true] %s15_s11 }
   0x3   :  { %s17_s13 = sshll.u32 %s1245_s12, 4  ;;  %s1246_s14 = smov 128   ;;  %s18_s13 = int_to_ptr.vmem [resolvable:$true] %s17_s13 }
   0x4   :  { %s1247_s15 = smov 8  }
   0x5   :  { %23 = dma.hbm_to_vmem [thread:$0]  %s16_s11, 4096, %s18_s13, [#allocation5], %s1246_s14, %s1246_s14, %s1247_s15  }
   0x6   :  { %1239 = dma.done.wait [#allocation5], 4096  }
   0x7   :  { %1240 = vsyncadd [#allocation5], 4294963200  ;;  %v1248_v0 = vmov -inf   ;;  %v1249_v1 = vmov 1073741824   ;;  %v1270_v2 = vld [vmem:[#allocation4 + $0x40] sm:$0xff]  ;;  %v1272_v3 = vld [vmem:[#allocation4 + $0x48] sm:$0xff] }
   0x8   :  { %32 = vst [vmem:[#allocation2] sm:$0xf] %v1248_v0  ;;  %v1274_v4 = vld [vmem:[#allocation4 + $0x50] sm:$0xff]  ;;  %v147_v5 = vmax.f32 %v1272_v3, %v1270_v2  ;;  %v1278_v6 = vld [vmem:[#allocation4 + $0x58] sm:$0xff]  ;;  %v1281_v8 = vld [vmem:[#allocation4 + $0x60] sm:$0xff]  ;;  %vm3222_vm0 = vcmask 1043456  }
   0x9   :  { %33 = vst [vmem:[#allocation3] sm:$0xf] %v1249_v1  ;;  %v1284_v10 = vld [vmem:[#allocation4 + $0x68] sm:$0xff]  ;;  %v1287_v12 = vld [vmem:[#allocation4 + $0x70] sm:$0xff]  ;;  %v1290_v14 = vld [vmem:[#allocation4 + $0x78] sm:$0xff]  ;;  %s1250_s0 = smov [#allocation7]  }
   0xa   :  { %3429 = vst [vmem:[#allocation13_spill] sm:$0xff] %v1270_v2  ;;  %v148_v7 = vmax.f32 %v1274_v4, %v147_v5  ;;  %v1293_v16 = vld [vmem:[#allocation4 + $0x80] sm:$0xff]  ;;  %v1296_v18 = vld [vmem:[#allocation4 + $0x88] sm:$0xff]  ;;  %v1299_v20 = vld [vmem:[#allocation4 + $0x90] sm:$0xff]  ;;  %s1131_s16 = sshll.u32 %s1250_s0, 4  ;;  %s1133_s19 = sshll.u32 %s3214_s1, 4  ;;  %s1132_s16 = int_to_ptr.vmem [resolvable:$true] %s1131_s16  ;;  %s1134_s19 = int_to_ptr.hbm [resolvable:$true] %s1133_s19 }
   0xb   :  { %3430 = vst [vmem:[#allocation14_spill] sm:$0xff] %v1272_v3  ;;  %v1302_v22 = vld [vmem:[#allocation4 + $0x98] sm:$0xff]  ;;  %v1305_v24 = vld [vmem:[#allocation4 + $0xa0] sm:$0xff]  ;;  %v1308_v26 = vld [vmem:[#allocation4 + $0xa8] sm:$0xff]  ;;  %s1251_s1 = smov [#allocation8]   ;;  %s1144_s23 = sshll.u32 %s3215_s2, 4  ;;  %s1145_s23 = int_to_ptr.hbm [resolvable:$true] %s1144_s23 }
   0xc   :  { %3431 = vst [vmem:[#allocation15_spill] sm:$0xff] %v1274_v4  ;;  %v149_v9 = vmax.f32 %v1278_v6, %v148_v7  ;;  %v1311_v28 = vld [vmem:[#allocation4 + $0xb0] sm:$0xff]  ;;  %v1314_v30 = vld [vmem:[#allocation4 + $0xb8] sm:$0xff]  ;;  %v1317_v32 = vld [vmem:[#allocation4 + $0xc0] sm:$0xff]  ;;  %s1142_s20 = sshll.u32 %s1251_s1, 4  ;;  %s1143_s20 = int_to_ptr.vmem [resolvable:$true] %s1142_s20 }
   0xd   :  { %3432 = vst [vmem:[#allocation16_spill] sm:$0xff] %v1278_v6  ;;  %v1320_v34 = vld [vmem:[#allocation4 + $0xc8] sm:$0xff]  ;;  %v1323_v36 = vld [vmem:[#allocation4 + $0xd0] sm:$0xff]  ;;  %v1326_v38 = vld [vmem:[#allocation4 + $0xd8] sm:$0xff] }
   0xe   :  { %3433 = vst [vmem:[#allocation17_spill] sm:$0xff] %v1281_v8  ;;  %v150_v11 = vmax.f32 %v1281_v8, %v149_v9  ;;  %v1329_v40 = vld [vmem:[#allocation4 + $0xe0] sm:$0xff]  ;;  %v1332_v42 = vld [vmem:[#allocation4 + $0xe8] sm:$0xff]  ;;  %v1341_v47 = vld [vmem:[#allocation4 + $0xf0] sm:$0xff]  ;;  %v66_v9 = vlaneseq }
   0xf   :  { %3434 = vst [vmem:[#allocation18_spill] sm:$0xff] %v1284_v10  ;;  %v1335_v44 = vld [vmem:[#allocation2] sm:$0xf]  ;;  %v1337_v45 = vld [vmem:[#allocation4] sm:$0xff]  ;;  %v1344_v49 = vld [vmem:[#allocation4 + $0x8] sm:$0xff] }
  0x10   :  { %3435 = vst [vmem:[#allocation19_spill] sm:$0xff] %v1287_v12  ;;  %v151_v13 = vmax.f32 %v1284_v10, %v150_v11  ;;  %v1339_v46 = vld [vmem:[#allocation4 + $0x20] sm:$0xff]  ;;  %v1346_v50 = vld [vmem:[#allocation4 + $0x28] sm:$0xff]  ;;  %v1348_v51 = vld [vmem:[#allocation4 + $0xf8] sm:$0xff]  ;;  %v136_v52 = vsel %vm3222_vm0, %v1335_v44, -inf }
  0x11   :  { %3436 = vst [vmem:[#allocation20_spill] sm:$0xff] %v1290_v14  ;;  %v143_v54 = vmax.f32 %v1337_v45, %v1339_v46  ;;  %v1355_v55 = vld [vmem:[#allocation4 + $0x10] sm:$0xff]  ;;  %v137_v58 = vrot.slane %v136_v52, 4  ;;  %v144_v59 = vmax.f32 %v1344_v49, %v1346_v50  ;;  %v1362_v60 = vld [vmem:[#allocation4 + $0x18] sm:$0xff] }
  0x12   :  { %v152_v15 = vmax.f32 %v1287_v12, %v151_v13  ;;  %3437 = vst [vmem:[#allocation21_spill] sm:$0xff] %v1293_v16  ;;  %v1357_v56 = vld [vmem:[#allocation4 + $0x30] sm:$0xff]  ;;  %v1364_v61 = vld [vmem:[#allocation4 + $0x38] sm:$0xff] }
  0x13   :  { %3438 = vst [vmem:[#allocation22_spill] sm:$0xff] %v1296_v18  ;;  %v145_v63 = vmax.f32 %v1355_v55, %v1357_v56  ;;  %v138_v0 = vmax.f32 %v136_v52, %v137_v58  ;;  %v146_v5 = vmax.f32 %v1362_v60, %v1364_v61 }
  0x14   :  { %v153_v17 = vmax.f32 %v1290_v14, %v152_v15  ;;  %3439 = vst [vmem:[#allocation23_spill] sm:$0xff] %v1299_v20 }
  0x15   :  { %3440 = vst [vmem:[#allocation24_spill] sm:$0xff] %v1302_v22  ;;  %v139_v11 = vrot.slane %v138_v0, 2 }
  0x16   :  { %v154_v19 = vmax.f32 %v1293_v16, %v153_v17  ;;  %3441 = vst [vmem:[#allocation25_spill] sm:$0xff] %v1305_v24  ;;  %v1370_v17 = vshrl.u32 %v66_v9, 7 }
  0x17   :  { %3442 = vst [vmem:[#allocation26_spill] sm:$0xff] %v1308_v26 }
  0x18   :  { %v155_v21 = vmax.f32 %v1296_v18, %v154_v19  ;;  %3443 = vst [vmem:[#allocation27_spill] sm:$0xff] %v1311_v28  ;;  %v140_v19 = vmax.f32 %v138_v0, %v139_v11  ;;  %v1409_v58 = vadd.s32 104, %v1370_v17  ;;  %v1427_v9 = vadd.s32 152, %v1370_v17 }
  0x19   :  { %3444 = vst [vmem:[#allocation28_spill] sm:$0xff] %v1314_v30  ;;  %v1430_v11 = vadd.s32 160, %v1370_v17 }
  0x1a   :  { %v156_v23 = vmax.f32 %v1299_v20, %v155_v21  ;;  %3445 = vst [vmem:[#allocation29_spill] sm:$0xff] %v1317_v32 }
  0x1b   :  { %3446 = vst [vmem:[#allocation30_spill] sm:$0xff] %v1320_v34 }
  0x1c   :  { %v157_v25 = vmax.f32 %v1302_v22, %v156_v23  ;;  %3447 = vst [vmem:[#allocation31_spill] sm:$0xff] %v1323_v36 }
  0x1d   :  { %3448 = vst [vmem:[#allocation32_spill] sm:$0xff] %v1326_v38 }
  0x1e   :  { %v158_v27 = vmax.f32 %v1305_v24, %v157_v25  ;;  %3449 = vst [vmem:[#allocation33_spill] sm:$0xff] %v1329_v40  ;;  %v1373_v25 = vadd.s32 8, %v1370_v17 }
  0x1f   :  { %3450 = vst [vmem:[#allocation34_spill] sm:$0xff] %v1332_v42 }
  0x20   :  { %v159_v29 = vmax.f32 %v1308_v26, %v158_v27  ;;  %3451 = vst [vmem:[#allocation35_spill] sm:$0xff] %v1335_v44  ;;  %v1376_v27 = vadd.s32 16, %v1370_v17 }
  0x21   :  { %3452 = vst [vmem:[#allocation36_spill] sm:$0xff] %v1337_v45 }
  0x22   :  { %v160_v31 = vmax.f32 %v1311_v28, %v159_v29  ;;  %3453 = vst [vmem:[#allocation37_spill] sm:$0xff] %v1339_v46  ;;  %v141_v29 = vrot.slane %v140_v19, 1 }
  0x23   :  { %3454 = vst [vmem:[#allocation38_spill] sm:$0xff] %v1341_v47 }
  0x24   :  { %v161_v33 = vmax.f32 %v1314_v30, %v160_v31  ;;  %3455 = vst [vmem:[#allocation39_spill] sm:$0xff] %v1344_v49 }
  0x25   :  { %3456 = vst [vmem:[#allocation40_spill] sm:$0xff] %v1346_v50 }
  0x26   :  { %v162_v35 = vmax.f32 %v1317_v32, %v161_v33  ;;  %3457 = vst [vmem:[#allocation41_spill] sm:$0xff] %v1348_v51  ;;  %v1379_v33 = vadd.s32 24, %v1370_v17 }
  0x27   :  { %3458 = vst [vmem:[#allocation42_spill] sm:$0xff] %v1355_v55 }
  0x28   :  { %v163_v37 = vmax.f32 %v1320_v34, %v162_v35  ;;  %3459 = vst [vmem:[#allocation43_spill] sm:$0xff] %v1357_v56  ;;  %v1382_v35 = vadd.s32 32, %v1370_v17 }
  0x29   :  { %3460 = vst [vmem:[#allocation44_spill] sm:$0xff] %v1362_v60 }
  0x2a   :  { %v164_v39 = vmax.f32 %v1323_v36, %v163_v37  ;;  %3461 = vst [vmem:[#allocation45_spill] sm:$0xff] %v1364_v61  ;;  %v1385_v37 = vadd.s32 40, %v1370_v17 }
  0x2b   :  { %3468 = vst [vmem:[#allocation52_spill] sm:$0xff] %v1409_v58 }
  0x2c   :  { %v165_v41 = vmax.f32 %v1326_v38, %v164_v39  ;;  %v1388_v39 = vadd.s32 48, %v1370_v17  ;;  %3474 = vst [vmem:[#allocation58_spill] sm:$0xff] %v1427_v9 }
  0x2d   :  { %3475 = vst [vmem:[#allocation59_spill] sm:$0xff] %v1430_v11 }
  0x2e   :  { %v166_v43 = vmax.f32 %v1329_v40, %v165_v41  ;;  %v1391_v41 = vadd.s32 56, %v1370_v17 }
  0x30   :  { %v167_v48 = vmax.f32 %v1332_v42, %v166_v43  ;;  %3462 = vst [vmem:[#allocation46_spill] sm:$0xff] %v1391_v41  ;;  %v1394_v43 = vadd.s32 64, %v1370_v17 }
  0x32   :  { %v168_v53 = vmax.f32 %v1341_v47, %v167_v48  ;;  %3463 = vst [vmem:[#allocation47_spill] sm:$0xff] %v1394_v43  ;;  %v1397_v48 = vadd.s32 72, %v1370_v17 }
  0x34   :  { %v169_v57 = vmax.f32 %v1348_v51, %v168_v53  ;;  %3464 = vst [vmem:[#allocation48_spill] sm:$0xff] %v1397_v48  ;;  %v1400_v53 = vadd.s32 80, %v1370_v17 }
  0x36   :  { %v170_v62 = vmax.f32 %v143_v54, %v169_v57  ;;  %3465 = vst [vmem:[#allocation49_spill] sm:$0xff] %v1400_v53  ;;  %v1403_v54 = vadd.s32 88, %v1370_v17  ;;  %v1406_v57 = vadd.s32 96, %v1370_v17 }
  0x38   :  { %v171_v1 = vmax.f32 %v144_v59, %v170_v62  ;;  %3466 = vst [vmem:[#allocation50_spill] sm:$0xff] %v1403_v54  ;;  %v1412_v59 = vadd.s32 112, %v1370_v17  ;;  %v1415_v62 = vadd.s32 120, %v1370_v17 }
  0x39   :  { %3467 = vst [vmem:[#allocation51_spill] sm:$0xff] %v1406_v57 }
  0x3a   :  { %v172_v7 = vmax.f32 %v145_v63, %v171_v1  ;;  %3469 = vst [vmem:[#allocation53_spill] sm:$0xff] %v1412_v59  ;;  %v142_v63 = vmax.f32 %v140_v19, %v141_v29  ;;  %v1418_v1 = vadd.s32 128, %v1370_v17  ;;  %v1438_v19 = vld [vmem:[#allocation3] sm:$0xf]  ;;  %v1446_v29 = vadd.s32 192, %v1370_v17 }
  0x3b   :  { %3470 = vst [vmem:[#allocation54_spill] sm:$0xff] %v1415_v62 }
  0x3c   :  { %v173_v13 = vmax.f32 %v146_v5, %v172_v7  ;;  %3471 = vst [vmem:[#allocation55_spill] sm:$0xff] %v1418_v1  ;;  %v1421_v5 = vadd.s32 136, %v1370_v17  ;;  %v1424_v7 = vadd.s32 144, %v1370_v17 }
  0x3d   :  { %3478 = vst [vmem:[#allocation62_spill] sm:$0xff] %v1438_v19 }
  0x3e   :  { %v174_v15 = vrot.slane %v173_v13, 4  ;;  %3472 = vst [vmem:[#allocation56_spill] sm:$0xff] %v1421_v5 }
  0x3f   :  { %3473 = vst [vmem:[#allocation57_spill] sm:$0xff] %v1424_v7 }
  0x40   :  { %v175_v21 = vmax.f32 %v173_v13, %v174_v15  ;;  %v1433_v13 = vadd.s32 168, %v1370_v17  ;;  %v1436_v15 = vadd.s32 176, %v1370_v17  ;;  %3481 = vst [vmem:[#allocation65_spill] sm:$0xff] %v1446_v29 }
  0x42   :  { %v176_v23 = vrot.slane %v175_v21, 2  ;;  %3476 = vst [vmem:[#allocation60_spill] sm:$0xff] %v1433_v13  ;;  %v1455_v13 = vadd.s32 216, %v1370_v17 }
  0x43   :  { %3477 = vst [vmem:[#allocation61_spill] sm:$0xff] %v1436_v15  ;;  %v1458_v15 = vadd.s32 224, %v1370_v17 }
  0x44   :  { %v177_v31 = vmax.f32 %v175_v21, %v176_v23  ;;  %v1443_v23 = vadd.s32 184, %v1370_v17  ;;  %3484 = vst [vmem:[#allocation68_spill] sm:$0xff] %v1455_v13 }
  0x45   :  { %3485 = vst [vmem:[#allocation69_spill] sm:$0xff] %v1458_v15 }
  0x46   :  { %v178_v52 = vrot.slane %v177_v31, 1  ;;  %3480 = vst [vmem:[#allocation64_spill] sm:$0xff] %v1443_v23 }
  0x48   :  { %v179_v0 = vmax.f32 %v177_v31, %v178_v52  ;;  %v1449_v31 = vadd.s32 200, %v1370_v17  ;;  %v1452_v52 = vadd.s32 208, %v1370_v17 }
  0x4a   :  { %v1440_v21 = vmax.f32 %v142_v63, %v179_v0  ;;  %3482 = vst [vmem:[#allocation66_spill] sm:$0xff] %v1449_v31  ;;  %v1461_v63 = vadd.s32 232, %v1370_v17  ;;  %v1466_v0 = vadd.s32 240, %v1370_v17  ;;  %v1469_v31 = vadd.s32 248, %v1370_v17 }
  0x4b   :  { %3483 = vst [vmem:[#allocation67_spill] sm:$0xff] %v1452_v52 }
  0x4c   :  { %3479 = vst [vmem:[#allocation63_spill] sm:$0xff] %v1440_v21  ;;  %vm181_vm1 = vcmp.eq.f32.partialorder %v1335_v44, %v1440_v21  ;;  %vm193_vm2 = vcmp.eq.f32.partialorder %v1337_v45, %v1440_v21  ;;  %vm194_vm3 = vcmp.eq.f32.partialorder %v1344_v49, %v1440_v21  ;;  %vm195_vm4 = vcmp.eq.f32.partialorder %v1355_v55, %v1440_v21 }
  0x4d   :  { %3486 = vst [vmem:[#allocation70_spill] sm:$0xff] %v1461_v63  ;;  %v182_v52 = vsel %vm181_vm1, %v1438_v19, 1073741824  ;;  %vm196_vm5 = vcmp.eq.f32.partialorder %v1362_v60, %v1440_v21  ;;  %vm197_vm6 = vcmp.eq.f32.partialorder %v1339_v46, %v1440_v21  ;;  %vm198_vm7 = vcmp.eq.f32.partialorder %v1346_v50, %v1440_v21 }
  0x4e   :  { %3487 = vst [vmem:[#allocation71_spill] sm:$0xff] %v1466_v0  ;;  %v183_v13 = vsel %vm3222_vm0, %v182_v52, 2147483647  ;;  %vm199_vm8 = vcmp.eq.f32.partialorder %v1357_v56, %v1440_v21  ;;  %vm200_vm9 = vcmp.eq.f32.partialorder %v1364_v61, %v1440_v21  ;;  %vm201_vm10 = vcmp.eq.f32.partialorder %v1270_v2, %v1440_v21 }
  0x4f   :  { %3488 = vst [vmem:[#allocation72_spill] sm:$0xff] %v1469_v31  ;;  %v184_v44 = vrot.slane %v183_v13, 4  ;;  %vm218_vm1 = vcmp.eq.f32.partialorder %v1320_v34, %v1440_v21  ;;  %vm220_vm0 = vcmp.eq.f32.partialorder %v1326_v38, %v1440_v21  ;;  %vm221_vm11 = vcmp.eq.f32.partialorder %v1329_v40, %v1440_v21 }
  0x50   :  { %vm222_vm12 = vcmp.eq.f32.partialorder %v1332_v42, %v1440_v21  ;;  %vm223_vm14 = vcmp.eq.f32.partialorder %v1341_v47, %v1440_v21  ;;  %vm224_vm15 = vcmp.eq.f32.partialorder %v1348_v51, %v1440_v21  ;;  %v227_v19 = vsel %vm195_vm4, %v1376_v27, 1073741824 }
  0x51   :  { %vm185_vm13 = vcmp.lt.s32.totalorder %v183_v13, %v184_v44  ;;  %v229_v45 = vsel %vm197_vm6, %v1382_v35, 1073741824  ;;  %v230_v49 = vsel %vm198_vm7, %v1385_v37, 1073741824  ;;  %v231_v55 = vsel %vm199_vm8, %v1388_v39, 1073741824 }
  0x52   :  { %v1501_v52 = vsel %vm185_vm13, %v183_v13, %v184_v44  ;;  %vm219_vm13 = vcmp.eq.f32.partialorder %v1323_v36, %v1440_v21  ;;  %v225_v13 = vsel %vm193_vm2, %v1370_v17, 1073741824  ;;  %v226_v44 = vsel %vm194_vm3, %v1373_v25, 1073741824 }
  0x53   :  { %3489 = vst [vmem:[#allocation73_spill] sm:$0xff] %v1501_v52  ;;  %v228_v52 = vsel %vm196_vm5, %v1379_v33, 1073741824  ;;  %v232_v60 = vsel %vm200_vm9, %v1391_v41, 1073741824  ;;  %v233_v46 = vsel %vm201_vm10, %v1394_v43, 1073741824  ;;  %vm3490_vm2 = vcmp.eq.f32.partialorder %v1272_v3, %v1440_v21 }
  0x54   :  { %v234_v50 = vsel %vm3490_vm2, %v1397_v48, 1073741824  ;;  %vm3491_vm3 = vcmp.eq.f32.partialorder %v1274_v4, %v1440_v21  ;;  %vm3492_vm4 = vcmp.eq.f32.partialorder %v1278_v6, %v1440_v21  ;;  %vm3493_vm5 = vcmp.eq.f32.partialorder %v1281_v8, %v1440_v21 }
  0x55   :  { %v235_v56 = vsel %vm3491_vm3, %v1400_v53, 1073741824  ;;  %v236_v61 = vsel %vm3492_vm4, %v1403_v54, 1073741824  ;;  %v237_v2 = vsel %vm3493_vm5, %v1406_v57, 1073741824  ;;  %vm3494_vm6 = vcmp.eq.f32.partialorder %v1284_v10, %v1440_v21 }
  0x56   :  { %v238_v3 = vsel %vm3494_vm6, %v1409_v58, 1073741824  ;;  %vm3495_vm7 = vcmp.eq.f32.partialorder %v1287_v12, %v1440_v21  ;;  %vm3496_vm8 = vcmp.eq.f32.partialorder %v1290_v14, %v1440_v21  ;;  %vm3497_vm9 = vcmp.eq.f32.partialorder %v1293_v16, %v1440_v21 }
  0x57   :  { %v239_v4 = vsel %vm3495_vm7, %v1412_v59, 1073741824  ;;  %v240_v6 = vsel %vm3496_vm8, %v1415_v62, 1073741824  ;;  %v241_v8 = vsel %vm3497_vm9, %v1418_v1, 1073741824  ;;  %vm3498_vm10 = vcmp.eq.f32.partialorder %v1296_v18, %v1440_v21  ;;  %v3502_v1 = vld [vmem:[#allocation60_spill] sm:$0xff] }
  0x58   :  { %v242_v10 = vsel %vm3498_vm10, %v1421_v5, 1073741824  ;;  %vm3499_vm2 = vcmp.eq.f32.partialorder %v1299_v20, %v1440_v21  ;;  %vm3500_vm3 = vcmp.eq.f32.partialorder %v1302_v22, %v1440_v21  ;;  %vm3501_vm4 = vcmp.eq.f32.partialorder %v1305_v24, %v1440_v21  ;;  %v3504_v5 = vld [vmem:[#allocation61_spill] sm:$0xff] }
  0x59   :  { %v243_v12 = vsel %vm3499_vm2, %v1424_v7, 1073741824  ;;  %v244_v14 = vsel %vm3500_vm3, %v1427_v9, 1073741824  ;;  %v245_v16 = vsel %vm3501_vm4, %v1430_v11, 1073741824  ;;  %vm3503_vm5 = vcmp.eq.f32.partialorder %v1308_v26, %v1440_v21  ;;  %v3508_v11 = vld [vmem:[#allocation66_spill] sm:$0xff] }
  0x5a   :  { %v246_v18 = vsel %vm3503_vm5, %v3502_v1, 1073741824  ;;  %vm3505_vm6 = vcmp.eq.f32.partialorder %v1311_v28, %v1440_v21  ;;  %vm3506_vm7 = vcmp.eq.f32.partialorder %v1314_v30, %v1440_v21  ;;  %vm3507_vm8 = vcmp.eq.f32.partialorder %v1317_v32, %v1440_v21  ;;  %v3509_v1 = vld [vmem:[#allocation67_spill] sm:$0xff] }
  0x5b   :  { %v247_v20 = vsel %vm3505_vm6, %v3504_v5, 1073741824  ;;  %v248_v22 = vsel %vm3506_vm7, %v1443_v23, 1073741824  ;;  %v249_v24 = vsel %vm3507_vm8, %v1446_v29, 1073741824  ;;  %v250_v26 = vsel %vm218_vm1, %v3508_v11, 1073741824  ;;  %v3510_v5 = vld [vmem:[#allocation68_spill] sm:$0xff] }
  0x5c   :  { %v251_v28 = vsel %vm219_vm13, %v3509_v1, 1073741824  ;;  %v252_v30 = vsel %vm220_vm0, %v3510_v5, 1073741824  ;;  %v253_v32 = vsel %vm221_vm11, %v1458_v15, 1073741824  ;;  %v254_v34 = vsel %vm222_vm12, %v1461_v63, 1073741824 }
  0x5d   :  { %v255_v36 = vsel %vm223_vm14, %v1466_v0, 1073741824  ;;  %v256_v38 = vsel %vm224_vm15, %v1469_v31, 1073741824  ;;  %vm257_vm0 = vcmp.lt.s32.totalorder %v225_v13, %v229_v45  ;;  %vm259_vm1 = vcmp.lt.s32.totalorder %v226_v44, %v230_v49 }
  0x5e   :  { %vm261_vm13 = vcmp.lt.s32.totalorder %v227_v19, %v231_v55  ;;  %vm263_vm9 = vcmp.lt.s32.totalorder %v228_v52, %v232_v60  ;;  %v258_v40 = vsel %vm257_vm0, %v225_v13, %v229_v45  ;;  %v260_v15 = vsel %vm259_vm1, %v226_v44, %v230_v49  ;;  %v3524_v44 = vld [vmem:[#allocation39_spill] sm:$0xff] }
  0x5f   :  { %v262_v5 = vsel %vm261_vm13, %v227_v19, %v231_v55  ;;  %v264_v1 = vsel %vm263_vm9, %v228_v52, %v232_v60  ;;  %vm265_vm11 = vcmp.lt.s32.totalorder %v258_v40, %v233_v46  ;;  %vm267_vm12 = vcmp.lt.s32.totalorder %v260_v15, %v234_v50  ;;  %v3518_v19 = vld [vmem:[#allocation56_spill] sm:$0xff] }
  0x60   :  { %vm269_vm10 = vcmp.lt.s32.totalorder %v262_v5, %v235_v56  ;;  %vm271_vm2 = vcmp.lt.s32.totalorder %v264_v1, %v236_v61  ;;  %v266_v42 = vsel %vm265_vm11, %v258_v40, %v233_v46  ;;  %v268_v47 = vsel %vm267_vm12, %v260_v15, %v234_v50  ;;  %v3517_v15 = vld [vmem:[#allocation55_spill] sm:$0xff] }
  0x61   :  { %v270_v0 = vsel %vm269_vm10, %v262_v5, %v235_v56  ;;  %v272_v63 = vsel %vm271_vm2, %v264_v1, %v236_v61  ;;  %vm273_vm14 = vcmp.lt.s32.totalorder %v266_v42, %v237_v2  ;;  %vm275_vm3 = vcmp.lt.s32.totalorder %v268_v47, %v238_v3  ;;  %v3515_v1 = vld [vmem:[#allocation62_spill] sm:$0xff]  ;;  %v3516_v5 = vld [vmem:[#allocation35_spill] sm:$0xff] }
  0x62   :  { %vm277_vm4 = vcmp.lt.s32.totalorder %v270_v0, %v239_v4  ;;  %vm279_vm15 = vcmp.lt.s32.totalorder %v272_v63, %v240_v6  ;;  %v274_v21 = vsel %vm273_vm14, %v266_v42, %v237_v2  ;;  %v276_v51 = vsel %vm275_vm3, %v268_v47, %v238_v3 }
  0x63   :  { %v278_v31 = vsel %vm277_vm4, %v270_v0, %v239_v4  ;;  %v280_v11 = vsel %vm279_vm15, %v272_v63, %v240_v6  ;;  %vm281_vm5 = vcmp.lt.s32.totalorder %v274_v21, %v241_v8  ;;  %vm283_vm6 = vcmp.lt.s32.totalorder %v276_v51, %v242_v10  ;;  %v3521_v63 = vld [vmem:[#allocation61_spill] sm:$0xff]  ;;  %v3522_v0 = vld [vmem:[#allocation36_spill] sm:$0xff] }
  0x64   :  { %vm285_vm7 = vcmp.lt.s32.totalorder %v278_v31, %v243_v12  ;;  %vm287_vm8 = vcmp.lt.s32.totalorder %v280_v11, %v244_v14  ;;  %v282_v45 = vsel %vm281_vm5, %v274_v21, %v241_v8  ;;  %v284_v49 = vsel %vm283_vm6, %v276_v51, %v242_v10  ;;  %v3519_v21 = vld [vmem:[#allocation59_spill] sm:$0xff] }
  0x65   :  { %v286_v55 = vsel %vm285_vm7, %v278_v31, %v243_v12  ;;  %v288_v60 = vsel %vm287_vm8, %v280_v11, %v244_v14  ;;  %vm289_vm0 = vcmp.lt.s32.totalorder %v282_v45, %v245_v16  ;;  %vm291_vm1 = vcmp.lt.s32.totalorder %v284_v49, %v246_v18  ;;  %v3520_v31 = vld [vmem:[#allocation60_spill] sm:$0xff] }
  0x66   :  { %vm293_vm13 = vcmp.lt.s32.totalorder %v286_v55, %v247_v20  ;;  %vm295_vm9 = vcmp.lt.s32.totalorder %v288_v60, %v248_v22  ;;  %v290_v40 = vsel %vm289_vm0, %v282_v45, %v245_v16  ;;  %v292_v46 = vsel %vm291_vm1, %v284_v49, %v246_v18  ;;  %v3526_v45 = vld [vmem:[#allocation42_spill] sm:$0xff] }
  0x67   :  { %v294_v50 = vsel %vm293_vm13, %v286_v55, %v247_v20  ;;  %v296_v56 = vsel %vm295_vm9, %v288_v60, %v248_v22  ;;  %vm297_vm11 = vcmp.lt.s32.totalorder %v290_v40, %v249_v24  ;;  %vm299_vm12 = vcmp.lt.s32.totalorder %v292_v46, %v250_v26  ;;  %v3511_v20 = vld [vmem:[#allocation73_spill] sm:$0xff] }
  0x68   :  { %vm301_vm10 = vcmp.lt.s32.totalorder %v294_v50, %v251_v28  ;;  %vm303_vm2 = vcmp.lt.s32.totalorder %v296_v56, %v252_v30  ;;  %v298_v2 = vsel %vm297_vm11, %v290_v40, %v249_v24  ;;  %v300_v3 = vsel %vm299_vm12, %v292_v46, %v250_v26  ;;  %v3528_v55 = vld [vmem:[#allocation37_spill] sm:$0xff]  ;;  %v3530_v40 = vld [vmem:[#allocation44_spill] sm:$0xff] }
  0x69   :  { %v302_v4 = vsel %vm301_vm10, %v294_v50, %v251_v28  ;;  %v304_v6 = vsel %vm303_vm2, %v296_v56, %v252_v30  ;;  %vm305_vm14 = vcmp.lt.s32.totalorder %v298_v2, %v253_v32  ;;  %vm307_vm3 = vcmp.lt.s32.totalorder %v300_v3, %v254_v34  ;;  %v3532_v50 = vld [vmem:[#allocation40_spill] sm:$0xff] }
  0x6a   :  { %vm309_vm4 = vcmp.lt.s32.totalorder %v302_v4, %v255_v36  ;;  %vm311_vm15 = vcmp.lt.s32.totalorder %v304_v6, %v256_v38  ;;  %v306_v8 = vsel %vm305_vm14, %v298_v2, %v253_v32  ;;  %v308_v10 = vsel %vm307_vm3, %v300_v3, %v254_v34  ;;  %v3534_v2 = vld [vmem:[#allocation43_spill] sm:$0xff] }
  0x6b   :  { %v310_v12 = vsel %vm309_vm4, %v302_v4, %v255_v36  ;;  %v312_v14 = vsel %vm311_vm15, %v304_v6, %v256_v38  ;;  %vm313_vm5 = vcmp.lt.s32.totalorder %v306_v8, %v308_v10  ;;  %v3512_v22 = vrot.slane %v3511_v20, 2  ;;  %v3536_v4 = vld [vmem:[#allocation45_spill] sm:$0xff] }
  0x6c   :  { %vm315_vm6 = vcmp.lt.s32.totalorder %v310_v12, %v312_v14  ;;  %v314_v16 = vsel %vm313_vm5, %v306_v8, %v308_v10  ;;  %v3538_v8 = vld [vmem:[#allocation66_spill] sm:$0xff]  ;;  %v3539_v10 = vld [vmem:[#allocation67_spill] sm:$0xff] }
  0x6d   :  { %v316_v18 = vsel %vm315_vm6, %v310_v12, %v312_v14  ;;  %vm188_vm8 = vcmp.lt.s32.totalorder %v3511_v20, %v3512_v22  ;;  %v3513_v28 = vmov %v3512_v22  ;;  %v3540_v12 = vld [vmem:[#allocation68_spill] sm:$0xff]  ;;  %v3541_v14 = vld [vmem:[#allocation69_spill] sm:$0xff] }
  0x6e   :  { %vm317_vm7 = vcmp.lt.s32.totalorder %v314_v16, %v316_v18  ;;  %v189_v30 = vsel %vm188_vm8, %v3511_v20, %v3513_v28  ;;  %v3544_v20 = vld [vmem:[#allocation14_spill] sm:$0xff]  ;;  %v3548_v28 = vld [vmem:[#allocation71_spill] sm:$0xff] }
  0x6f   :  { %v318_v24 = vsel %vm317_vm7, %v314_v16, %v316_v18  ;;  %v190_v36 = vrot.slane %v189_v30, 1  ;;  %v3542_v16 = vld [vmem:[#allocation13_spill] sm:$0xff] }
  0x70   :  { %v319_v26 = vrot.slane %v318_v24, 4 }
  0x71   :  { %vm191_vm13 = vcmp.lt.s32.totalorder %v189_v30, %v190_v36 }
  0x72   :  { %vm320_vm0 = vcmp.lt.s32.totalorder %v318_v24, %v319_v26  ;;  %v192_v51 = vsel %vm191_vm13, %v189_v30, %v190_v36  ;;  %v3549_v30 = vld [vmem:[#allocation72_spill] sm:$0xff] }
  0x73   :  { %v321_v32 = vsel %vm320_vm0, %v318_v24, %v319_v26  ;;  %v3547_v26 = vld [vmem:[#allocation70_spill] sm:$0xff] }
  0x74   :  { %v322_v34 = vrot.slane %v321_v32, 2 }
  0x76   :  { %vm323_vm1 = vcmp.lt.s32.totalorder %v321_v32, %v322_v34 }
  0x77   :  { %v324_v38 = vsel %vm323_vm1, %v321_v32, %v322_v34  ;;  %v3550_v32 = vld [vmem:[#allocation15_spill] sm:$0xff] }
  0x78   :  { %v325_v42 = vrot.slane %v324_v38, 1 }
  0x7a   :  { %vm326_vm9 = vcmp.lt.s32.totalorder %v324_v38, %v325_v42 }
  0x7b   :  { %v327_v47 = vsel %vm326_vm9, %v324_v38, %v325_v42 }
  0x7c   :  { %vm328_vm11 = vcmp.lt.s32.totalorder %v192_v51, %v327_v47 }
  0x7d   :  { %v1674_v61 = vsel %vm328_vm11, %v192_v51, %v327_v47  ;;  %v3553_v47 = vld [vmem:[#allocation16_spill] sm:$0xff] }
  0x7e   :  { %3514 = vst [vmem:[#allocation73_spill] sm:$0xff] %v1674_v61  ;;  %vm330_vm12 = vcmp.eq.s32.totalorder %v3515_v1, %v1674_v61  ;;  %vm332_vm10 = vcmp.eq.s32.totalorder %v1370_v17, %v1674_v61  ;;  %vm333_vm2 = vcmp.eq.s32.totalorder %v1373_v25, %v1674_v61  ;;  %vm334_vm14 = vcmp.eq.s32.totalorder %v1376_v27, %v1674_v61 }
  0x7f   :  { %v1685_v11 = vsel %vm330_vm12, -inf, %v3516_v5  ;;  %vm335_vm3 = vcmp.eq.s32.totalorder %v1379_v33, %v1674_v61  ;;  %vm336_vm4 = vcmp.eq.s32.totalorder %v1382_v35, %v1674_v61  ;;  %vm337_vm15 = vcmp.eq.s32.totalorder %v1385_v37, %v1674_v61  ;;  %v3556_v5 = vld [vmem:[#allocation17_spill] sm:$0xff] }
  0x80   :  { %vm338_vm5 = vcmp.eq.s32.totalorder %v1388_v39, %v1674_v61  ;;  %vm339_vm6 = vcmp.eq.s32.totalorder %v1391_v41, %v1674_v61  ;;  %vm340_vm7 = vcmp.eq.s32.totalorder %v1394_v43, %v1674_v61  ;;  %vm349_vm0 = vcmp.eq.s32.totalorder %v3518_v19, %v1674_v61  ;;  %v3577_v19 = vld [vmem:[#allocation25_spill] sm:$0xff] }
  0x81   :  { %vm350_vm1 = vcmp.eq.s32.totalorder %v1424_v7, %v1674_v61  ;;  %vm351_vm13 = vcmp.eq.s32.totalorder %v1427_v9, %v1674_v61  ;;  %vm352_vm9 = vcmp.eq.s32.totalorder %v3519_v21, %v1674_v61  ;;  %vm353_vm11 = vcmp.eq.s32.totalorder %v3520_v31, %v1674_v61  ;;  %v3582_v21 = vld [vmem:[#allocation27_spill] sm:$0xff] }
  0x82   :  { %vm354_vm12 = vcmp.eq.s32.totalorder %v3521_v63, %v1674_v61  ;;  %vm355_vm8 = vcmp.eq.s32.totalorder %v1443_v23, %v1674_v61  ;;  %v1733_v52 = vsel %vm332_vm10, -inf, %v3522_v0  ;;  %v1739_v13 = vsel %vm333_vm2, -inf, %v3524_v44  ;;  %v3559_v44 = vld [vmem:[#allocation18_spill] sm:$0xff]  ;;  %v3590_v23 = vld [vmem:[#allocation31_spill] sm:$0xff] }
  0x83   :  { %3523 = vst [vmem:[#allocation62_spill] sm:$0xff] %v1733_v52  ;;  %v1745_v49 = vsel %vm334_vm14, -inf, %v3526_v45  ;;  %v1751_v60 = vsel %vm336_vm4, -inf, %v3528_v55  ;;  %v1757_v46 = vsel %vm335_vm3, -inf, %v3530_v40  ;;  %v1763_v56 = vsel %vm337_vm15, -inf, %v3532_v50  ;;  %v3562_v40 = vld [vmem:[#allocation19_spill] sm:$0xff] }
  0x84   :  { %3525 = vst [vmem:[#allocation35_spill] sm:$0xff] %v1739_v13  ;;  %v1769_v3 = vsel %vm338_vm5, -inf, %v3534_v2  ;;  %v1775_v6 = vsel %vm339_vm6, -inf, %v3536_v4  ;;  %vm356_vm10 = vcmp.eq.s32.totalorder %v1446_v29, %v1674_v61  ;;  %vm357_vm2 = vcmp.eq.s32.totalorder %v3538_v8, %v1674_v61  ;;  %v3597_v29 = vld [vmem:[#allocation34_spill] sm:$0xff] }
  0x85   :  { %3527 = vst [vmem:[#allocation36_spill] sm:$0xff] %v1745_v49  ;;  %vm358_vm14 = vcmp.eq.s32.totalorder %v3539_v10, %v1674_v61  ;;  %vm359_vm3 = vcmp.eq.s32.totalorder %v3540_v12, %v1674_v61  ;;  %v1791_v18 = vsel %vm340_vm7, -inf, %v3542_v16  ;;  %vm3545_vm15 = vcmp.eq.s32.totalorder %v1397_v48, %v1674_v61  ;;  %v3599_v12 = vld [vmem:[#allocation38_spill] sm:$0xff] }
  0x86   :  { %3529 = vst [vmem:[#allocation39_spill] sm:$0xff] %v1751_v60  ;;  %v1797_v22 = vsel %vm3545_vm15, -inf, %v3544_v20  ;;  %v403_v24 = vmax.f32 %v1733_v52, %v1751_v60  ;;  %vm361_vm5 = vcmp.eq.s32.totalorder %v3547_v26, %v1674_v61  ;;  %vm3551_vm7 = vcmp.eq.s32.totalorder %v1400_v53, %v1674_v61  ;;  %v3565_v20 = vld [vmem:[#allocation20_spill] sm:$0xff] }
  0x87   :  { %3531 = vst [vmem:[#allocation42_spill] sm:$0xff] %v1757_v46  ;;  %v1811_v34 = vsel %vm3551_vm7, -inf, %v3550_v32  ;;  %v404_v36 = vmax.f32 %v1739_v13, %v1763_v56  ;;  %v405_v38 = vmax.f32 %v1745_v49, %v1769_v3  ;;  %v406_v42 = vmax.f32 %v1757_v46, %v1775_v6 }
  0x88   :  { %3533 = vst [vmem:[#allocation37_spill] sm:$0xff] %v1763_v56  ;;  %vm3554_vm15 = vcmp.eq.s32.totalorder %v1403_v54, %v1674_v61  ;;  %vm3557_vm7 = vcmp.eq.s32.totalorder %v1406_v57, %v1674_v61  ;;  %vm3560_vm4 = vcmp.eq.s32.totalorder %v1409_v58, %v1674_v61  ;;  %v407_v55 = vmax.f32 %v403_v24, %v1791_v18 }
  0x89   :  { %3535 = vst [vmem:[#allocation44_spill] sm:$0xff] %v1769_v3  ;;  %v1823_v51 = vsel %vm3554_vm15, -inf, %v3553_v47  ;;  %v1829_v0 = vsel %vm3557_vm7, -inf, %v3556_v5  ;;  %v1835_v45 = vsel %vm3560_vm4, -inf, %v3559_v44  ;;  %vm3563_vm6 = vcmp.eq.s32.totalorder %v1412_v59, %v1674_v61  ;;  %v3568_v47 = vld [vmem:[#allocation21_spill] sm:$0xff]  ;;  %v3571_v5 = vld [vmem:[#allocation22_spill] sm:$0xff] }
  0x8a   :  { %3537 = vst [vmem:[#allocation40_spill] sm:$0xff] %v1775_v6  ;;  %v1842_v50 = vsel %vm3563_vm6, -inf, %v3562_v40  ;;  %v408_v2 = vmax.f32 %v404_v36, %v1797_v22  ;;  %v409_v4 = vmax.f32 %v405_v38, %v1811_v34  ;;  %v410_v16 = vmax.f32 %v406_v42, %v1823_v51  ;;  %v3573_v42 = vld [vmem:[#allocation23_spill] sm:$0xff]  ;;  %v3588_v59 = vld [vmem:[#allocation30_spill] sm:$0xff] }
  0x8b   :  { %3543 = vst [vmem:[#allocation43_spill] sm:$0xff] %v1791_v18  ;;  %vm3566_vm15 = vcmp.eq.s32.totalorder %v1415_v62, %v1674_v61  ;;  %vm3569_vm4 = vcmp.eq.s32.totalorder %v3517_v15, %v1674_v61  ;;  %v1863_v36 = vsel %vm349_vm0, -inf, %v3571_v5  ;;  %v411_v38 = vmax.f32 %v407_v55, %v1829_v0  ;;  %v3575_v15 = vld [vmem:[#allocation24_spill] sm:$0xff] }
  0x8c   :  { %3546 = vst [vmem:[#allocation45_spill] sm:$0xff] %v1797_v22  ;;  %v1851_v32 = vsel %vm3566_vm15, -inf, %v3565_v20  ;;  %v1857_v24 = vsel %vm3569_vm4, -inf, %v3568_v47  ;;  %v1870_v44 = vsel %vm350_vm1, -inf, %v3573_v42  ;;  %v412_v40 = vmax.f32 %v408_v2, %v1835_v45  ;;  %v3584_v62 = vld [vmem:[#allocation28_spill] sm:$0xff] }
  0x8d   :  { %3552 = vst [vmem:[#allocation13_spill] sm:$0xff] %v1811_v34  ;;  %v413_v20 = vmax.f32 %v409_v4, %v1842_v50  ;;  %v414_v47 = vmax.f32 %v410_v16, %v1851_v32  ;;  %v1879_v5 = vsel %vm351_vm13, -inf, %v3575_v15  ;;  %v1885_v55 = vsel %vm352_vm9, -inf, %v3577_v19  ;;  %v3580_v4 = vld [vmem:[#allocation26_spill] sm:$0xff] }
  0x8e   :  { %3555 = vst [vmem:[#allocation14_spill] sm:$0xff] %v1823_v51  ;;  %vm3579_vm0 = vcmask 1043456   ;;  %v415_v2 = vmax.f32 %v411_v38, %v1857_v24  ;;  %v1894_v16 = vsel %vm353_vm11, -inf, %v3580_v4  ;;  %v416_v15 = vmax.f32 %v412_v40, %v1863_v36  ;;  %v3586_v4 = vld [vmem:[#allocation29_spill] sm:$0xff] }
  0x8f   :  { %3558 = vst [vmem:[#allocation15_spill] sm:$0xff] %v1829_v0  ;;  %v396_v42 = vsel %vm3579_vm0, %v1685_v11, -inf  ;;  %v417_v9 = vmax.f32 %v413_v20, %v1870_v44  ;;  %v418_v7 = vmax.f32 %v414_v47, %v1879_v5  ;;  %v1903_v19 = vsel %vm354_vm12, -inf, %v3582_v21  ;;  %vm3606_vm12 = vmmov %vm3579_vm0 }
  0x90   :  { %3561 = vst [vmem:[#allocation16_spill] sm:$0xff] %v1835_v45  ;;  %v1909_v38 = vsel %vm355_vm8, -inf, %v3584_v62  ;;  %v1915_v40 = vsel %vm356_vm10, -inf, %v3586_v4  ;;  %v419_v20 = vmax.f32 %v415_v2, %v1885_v55  ;;  %v397_v47 = vrot.slane %v396_v42, 4  ;;  %v3592_v2 = vld [vmem:[#allocation32_spill] sm:$0xff] }
  0x91   :  { %3564 = vst [vmem:[#allocation17_spill] sm:$0xff] %v1842_v50  ;;  %v420_v31 = vmax.f32 %v416_v15, %v1894_v16  ;;  %v421_v21 = vmax.f32 %v417_v9, %v1903_v19  ;;  %v422_v63 = vmax.f32 %v418_v7, %v1909_v38  ;;  %v1925_v62 = vsel %vm357_vm2, -inf, %v3588_v59  ;;  %v3594_v9 = vld [vmem:[#allocation33_spill] sm:$0xff] }
  0x92   :  { %3567 = vst [vmem:[#allocation18_spill] sm:$0xff] %v1851_v32  ;;  %v1931_v4 = vsel %vm358_vm14, -inf, %v3590_v23  ;;  %v1937_v15 = vsel %vm359_vm3, -inf, %v3592_v2  ;;  %v423_v7 = vmax.f32 %v419_v20, %v1915_v40  ;;  %vm3595_vm8 = vcmp.eq.s32.totalorder %v3541_v14, %v1674_v61 }
  0x93   :  { %3570 = vst [vmem:[#allocation19_spill] sm:$0xff] %v1857_v24  ;;  %v1944_v59 = vsel %vm3595_vm8, -inf, %v3594_v9  ;;  %v424_v8 = vmax.f32 %v420_v31, %v1925_v62  ;;  %v425_v10 = vmax.f32 %v421_v21, %v1931_v4  ;;  %v426_v23 = vmax.f32 %v422_v63, %v1937_v15  ;;  %v3602_v9 = vld [vmem:[#allocation41_spill] sm:$0xff] }
  0x94   :  { %3572 = vst [vmem:[#allocation20_spill] sm:$0xff] %v1863_v36  ;;  %v1953_v2 = vsel %vm361_vm5, -inf, %v3597_v29  ;;  %vm3600_vm1 = vcmp.eq.s32.totalorder %v3548_v28, %v1674_v61  ;;  %vm3603_vm13 = vcmp.eq.s32.totalorder %v3549_v30, %v1674_v61  ;;  %v427_v63 = vmax.f32 %v423_v7, %v1944_v59 }
  0x95   :  { %3574 = vst [vmem:[#allocation21_spill] sm:$0xff] %v1870_v44  ;;  %v1959_v20 = vsel %vm3600_vm1, -inf, %v3599_v12  ;;  %v1965_v31 = vsel %vm3603_vm13, -inf, %v3602_v9  ;;  %v398_v21 = vmax.f32 %v396_v42, %v397_v47  ;;  %v428_v14 = vmax.f32 %v424_v8, %v1953_v2  ;;  %v3608_v47 = vld [vmem:[#allocation47_spill] sm:$0xff] }
  0x96   :  { %3576 = vst [vmem:[#allocation22_spill] sm:$0xff] %v1879_v5  ;;  %v429_v29 = vmax.f32 %v425_v10, %v1959_v20  ;;  %v430_v26 = vmax.f32 %v426_v23, %v1965_v31 }
  0x97   :  { %3578 = vst [vmem:[#allocation23_spill] sm:$0xff] %v1885_v55  ;;  %v431_v58 = vmax.f32 %v427_v63, %v428_v14  ;;  %v399_v28 = vrot.slane %v398_v21, 2  ;;  %v3609_v63 = vld [vmem:[#allocation48_spill] sm:$0xff] }
  0x98   :  { %3581 = vst [vmem:[#allocation24_spill] sm:$0xff] %v1894_v16  ;;  %v432_v57 = vmax.f32 %v429_v29, %v430_v26  ;;  %v3611_v29 = vld [vmem:[#allocation49_spill] sm:$0xff] }
  0x99   :  { %3583 = vst [vmem:[#allocation25_spill] sm:$0xff] %v1903_v19  ;;  %v400_v53 = vmax.f32 %v398_v21, %v399_v28  ;;  %v3607_v28 = vld [vmem:[#allocation46_spill] sm:$0xff] }
  0x9a   :  { %3585 = vst [vmem:[#allocation26_spill] sm:$0xff] %v1909_v38  ;;  %v433_v12 = vmax.f32 %v431_v58, %v432_v57 }
  0x9b   :  { %3587 = vst [vmem:[#allocation27_spill] sm:$0xff] %v1915_v40  ;;  %v401_v61 = vrot.slane %v400_v53, 1 }
  0x9c   :  { %3589 = vst [vmem:[#allocation28_spill] sm:$0xff] %v1925_v62  ;;  %v434_v54 = vrot.slane %v433_v12, 4 }
  0x9d   :  { %3591 = vst [vmem:[#allocation29_spill] sm:$0xff] %v1931_v4  ;;  %v402_v41 = vmax.f32 %v400_v53, %v401_v61 }
  0x9e   :  { %3593 = vst [vmem:[#allocation30_spill] sm:$0xff] %v1937_v15  ;;  %v435_v48 = vmax.f32 %v433_v12, %v434_v54 }
  0x9f   :  { %3596 = vst [vmem:[#allocation31_spill] sm:$0xff] %v1944_v59 }
  0xa0   :  { %3598 = vst [vmem:[#allocation32_spill] sm:$0xff] %v1953_v2  ;;  %v436_v43 = vrot.slane %v435_v48, 2 }
  0xa1   :  { %3601 = vst [vmem:[#allocation33_spill] sm:$0xff] %v1959_v20 }
  0xa2   :  { %3604 = vst [vmem:[#allocation34_spill] sm:$0xff] %v1965_v31  ;;  %v437_v9 = vmax.f32 %v435_v48, %v436_v43 }
  0xa4   :  { %v438_v30 = vrot.slane %v437_v9, 1 }
  0xa6   :  { %v439_v7 = vmax.f32 %v437_v9, %v438_v30  ;;  %v3613_v9 = vld [vmem:[#allocation50_spill] sm:$0xff] }
  0xa8   :  { %v1971_v42 = vmax.f32 %v402_v41, %v439_v7 }
  0xaa   :  { %3605 = vst [vmem:[#allocation38_spill] sm:$0xff] %v1971_v42  ;;  %vm441_vm9 = vcmp.eq.f32.partialorder %v1685_v11, %v1971_v42  ;;  %vm453_vm11 = vcmp.eq.f32.partialorder %v1733_v52, %v1971_v42  ;;  %vm454_vm10 = vcmp.eq.f32.partialorder %v1739_v13, %v1971_v42  ;;  %vm455_vm2 = vcmp.eq.f32.partialorder %v1745_v49, %v1971_v42  ;;  %v3633_v49 = vld [vmem:[#allocation60_spill] sm:$0xff]  ;;  %v3635_v13 = vld [vmem:[#allocation61_spill] sm:$0xff] }
  0xab   :  { %v442_v8 = vsel %vm441_vm9, %v3515_v1, 1073741824  ;;  %vm456_vm14 = vcmp.eq.f32.partialorder %v1757_v46, %v1971_v42  ;;  %vm457_vm3 = vcmp.eq.f32.partialorder %v1751_v60, %v1971_v42  ;;  %vm458_vm5 = vcmp.eq.f32.partialorder %v1763_v56, %v1971_v42  ;;  %v3627_v56 = vld [vmem:[#allocation57_spill] sm:$0xff]  ;;  %v3629_v46 = vld [vmem:[#allocation58_spill] sm:$0xff]  ;;  %v3631_v60 = vld [vmem:[#allocation59_spill] sm:$0xff] }
  0xac   :  { %v443_v57 = vsel %vm3606_vm12, %v442_v8, 2147483647  ;;  %vm459_vm6 = vcmp.eq.f32.partialorder %v1769_v3, %v1971_v42  ;;  %vm460_vm7 = vcmp.eq.f32.partialorder %v1775_v6, %v1971_v42  ;;  %vm461_vm15 = vcmp.eq.f32.partialorder %v1791_v18, %v1971_v42  ;;  %v3615_v8 = vld [vmem:[#allocation51_spill] sm:$0xff]  ;;  %v3621_v18 = vld [vmem:[#allocation54_spill] sm:$0xff]  ;;  %v3625_v3 = vld [vmem:[#allocation56_spill] sm:$0xff] }
  0xad   :  { %v444_v41 = vrot.slane %v443_v57, 4  ;;  %vm478_vm9 = vcmp.eq.f32.partialorder %v1925_v62, %v1971_v42  ;;  %vm480_vm12 = vcmp.eq.f32.partialorder %v1937_v15, %v1971_v42  ;;  %vm481_vm4 = vcmp.eq.f32.partialorder %v1944_v59, %v1971_v42  ;;  %v3623_v6 = vld [vmem:[#allocation55_spill] sm:$0xff]  ;;  %v3637_v52 = vld [vmem:[#allocation64_spill] sm:$0xff] }
  0xae   :  { %vm482_vm0 = vcmp.eq.f32.partialorder %v1953_v2, %v1971_v42  ;;  %vm483_vm1 = vcmp.eq.f32.partialorder %v1959_v20, %v1971_v42  ;;  %vm484_vm13 = vcmp.eq.f32.partialorder %v1965_v31, %v1971_v42  ;;  %v485_v53 = vsel %vm453_vm11, %v1370_v17, 1073741824 }
  0xaf   :  { %vm445_vm8 = vcmp.lt.s32.totalorder %v443_v57, %v444_v41  ;;  %v486_v54 = vsel %vm454_vm10, %v1373_v25, 1073741824  ;;  %v487_v58 = vsel %vm455_vm2, %v1376_v27, 1073741824  ;;  %v488_v61 = vsel %vm456_vm14, %v1379_v33, 1073741824 }
  0xb0   :  { %v2005_v43 = vsel %vm445_vm8, %v443_v57, %v444_v41  ;;  %vm479_vm8 = vcmp.eq.f32.partialorder %v1931_v4, %v1971_v42  ;;  %v489_v10 = vsel %vm457_vm3, %v1382_v35, 1073741824  ;;  %v490_v14 = vsel %vm458_vm5, %v1385_v37, 1073741824  ;;  %v3617_v41 = vld [vmem:[#allocation52_spill] sm:$0xff] }
  0xb1   :  { %v491_v26 = vsel %vm459_vm6, %v1388_v39, 1073741824  ;;  %v492_v30 = vsel %vm460_vm7, %v3607_v28, 1073741824  ;;  %v493_v23 = vsel %vm461_vm15, %v3608_v47, 1073741824  ;;  %vm3610_vm11 = vcmp.eq.f32.partialorder %v1797_v22, %v1971_v42  ;;  %v3619_v22 = vld [vmem:[#allocation53_spill] sm:$0xff] }
  0xb2   :  { %v494_v21 = vsel %vm3610_vm11, %v3609_v63, 1073741824  ;;  %vm3612_vm10 = vcmp.eq.f32.partialorder %v1811_v34, %v1971_v42  ;;  %vm3614_vm2 = vcmp.eq.f32.partialorder %v1823_v51, %v1971_v42  ;;  %vm3616_vm14 = vcmp.eq.f32.partialorder %v1829_v0, %v1971_v42 }
  0xb3   :  { %v495_v12 = vsel %vm3612_vm10, %v3611_v29, 1073741824  ;;  %v496_v7 = vsel %vm3614_vm2, %v3613_v9, 1073741824  ;;  %v497_v57 = vsel %vm3616_vm14, %v3615_v8, 1073741824  ;;  %vm3618_vm3 = vcmp.eq.f32.partialorder %v1835_v45, %v1971_v42 }
  0xb4   :  { %v498_v48 = vsel %vm3618_vm3, %v3617_v41, 1073741824  ;;  %vm3620_vm5 = vcmp.eq.f32.partialorder %v1842_v50, %v1971_v42  ;;  %vm3622_vm6 = vcmp.eq.f32.partialorder %v1851_v32, %v1971_v42  ;;  %vm3624_vm7 = vcmp.eq.f32.partialorder %v1857_v24, %v1971_v42 }
  0xb5   :  { %v499_v34 = vsel %vm3620_vm5, %v3619_v22, 1073741824  ;;  %v500_v51 = vsel %vm3622_vm6, %v3621_v18, 1073741824  ;;  %v501_v0 = vsel %vm3624_vm7, %v3623_v6, 1073741824  ;;  %vm3626_vm15 = vcmp.eq.f32.partialorder %v1863_v36, %v1971_v42 }
  0xb6   :  { %v502_v45 = vsel %vm3626_vm15, %v3625_v3, 1073741824  ;;  %vm3628_vm11 = vcmp.eq.f32.partialorder %v1870_v44, %v1971_v42  ;;  %vm3630_vm10 = vcmp.eq.f32.partialorder %v1879_v5, %v1971_v42  ;;  %vm3632_vm2 = vcmp.eq.f32.partialorder %v1885_v55, %v1971_v42 }
  0xb7   :  { %v503_v50 = vsel %vm3628_vm11, %v3627_v56, 1073741824  ;;  %v504_v32 = vsel %vm3630_vm10, %v3629_v46, 1073741824  ;;  %v505_v24 = vsel %vm3632_vm2, %v3631_v60, 1073741824  ;;  %vm3634_vm14 = vcmp.eq.f32.partialorder %v1894_v16, %v1971_v42  ;;  %v3639_v46 = vld [vmem:[#allocation65_spill] sm:$0xff]  ;;  %v3641_v60 = vld [vmem:[#allocation66_spill] sm:$0xff] }
  0xb8   :  { %v506_v36 = vsel %vm3634_vm14, %v3633_v49, 1073741824  ;;  %vm3636_vm3 = vcmp.eq.f32.partialorder %v1903_v19, %v1971_v42  ;;  %vm3638_vm5 = vcmp.eq.f32.partialorder %v1909_v38, %v1971_v42  ;;  %vm3640_vm6 = vcmp.eq.f32.partialorder %v1915_v40, %v1971_v42  ;;  %v3642_v49 = vld [vmem:[#allocation67_spill] sm:$0xff] }
  0xb9   :  { %v507_v44 = vsel %vm3636_vm3, %v3635_v13, 1073741824  ;;  %v508_v5 = vsel %vm3638_vm5, %v3637_v52, 1073741824  ;;  %v509_v55 = vsel %vm3640_vm6, %v3639_v46, 1073741824  ;;  %v510_v16 = vsel %vm478_vm9, %v3641_v60, 1073741824  ;;  %v3643_v13 = vld [vmem:[#allocation68_spill] sm:$0xff]  ;;  %v3644_v52 = vld [vmem:[#allocation69_spill] sm:$0xff] }
  0xba   :  { %v511_v19 = vsel %vm479_vm8, %v3642_v49, 1073741824  ;;  %v512_v38 = vsel %vm480_vm12, %v3643_v13, 1073741824  ;;  %v513_v40 = vsel %vm481_vm4, %v3644_v52, 1073741824  ;;  %v3645_v46 = vld [vmem:[#allocation70_spill] sm:$0xff]  ;;  %v3646_v60 = vld [vmem:[#allocation71_spill] sm:$0xff]  ;;  %v3647_v49 = vld [vmem:[#allocation72_spill] sm:$0xff]  ;;  %vm517_vm9 = vcmp.lt.s32.totalorder %v485_v53, %v489_v10 }
  0xbb   :  { %v514_v62 = vsel %vm482_vm0, %v3645_v46, 1073741824  ;;  %v515_v4 = vsel %vm483_vm1, %v3646_v60, 1073741824  ;;  %v516_v15 = vsel %vm484_vm13, %v3647_v49, 1073741824  ;;  %vm519_vm12 = vcmp.lt.s32.totalorder %v486_v54, %v490_v14 }
  0xbc   :  { %vm521_vm8 = vcmp.lt.s32.totalorder %v487_v58, %v491_v26  ;;  %vm523_vm7 = vcmp.lt.s32.totalorder %v488_v61, %v492_v30  ;;  %v518_v59 = vsel %vm517_vm9, %v485_v53, %v489_v10  ;;  %v520_v52 = vsel %vm519_vm12, %v486_v54, %v490_v14  ;;  %v3657_v10 = vld [vmem:[#allocation64_spill] sm:$0xff]  ;;  %v3658_v14 = vld [vmem:[#allocation62_spill] sm:$0xff] }
  0xbd   :  { %v522_v13 = vsel %vm521_vm8, %v487_v58, %v491_v26  ;;  %v524_v56 = vsel %vm523_vm7, %v488_v61, %v492_v30  ;;  %vm525_vm4 = vcmp.lt.s32.totalorder %v518_v59, %v493_v23  ;;  %vm527_vm0 = vcmp.lt.s32.totalorder %v520_v52, %v494_v21  ;;  %v3660_v30 = vld [vmem:[#allocation35_spill] sm:$0xff] }
  0xbe   :  { %vm529_vm15 = vcmp.lt.s32.totalorder %v522_v13, %v495_v12  ;;  %vm531_vm11 = vcmp.lt.s32.totalorder %v524_v56, %v496_v7  ;;  %v526_v2 = vsel %vm525_vm4, %v518_v59, %v493_v23  ;;  %v528_v20 = vsel %vm527_vm0, %v520_v52, %v494_v21  ;;  %v3662_v21 = vld [vmem:[#allocation36_spill] sm:$0xff] }
  0xbf   :  { %v530_v60 = vsel %vm529_vm15, %v522_v13, %v495_v12  ;;  %v532_v46 = vsel %vm531_vm11, %v524_v56, %v496_v7  ;;  %vm533_vm1 = vcmp.lt.s32.totalorder %v526_v2, %v497_v57  ;;  %vm535_vm10 = vcmp.lt.s32.totalorder %v528_v20, %v498_v48  ;;  %v3664_v7 = vld [vmem:[#allocation39_spill] sm:$0xff] }
  0xc0   :  { %vm537_vm2 = vcmp.lt.s32.totalorder %v530_v60, %v499_v34  ;;  %vm539_vm13 = vcmp.lt.s32.totalorder %v532_v46, %v500_v51  ;;  %v534_v42 = vsel %vm533_vm1, %v526_v2, %v497_v57  ;;  %v536_v31 = vsel %vm535_vm10, %v528_v20, %v498_v48  ;;  %v3656_v48 = vld [vmem:[#allocation61_spill] sm:$0xff] }
  0xc1   :  { %v538_v49 = vsel %vm537_vm2, %v530_v60, %v499_v34  ;;  %v540_v3 = vsel %vm539_vm13, %v532_v46, %v500_v51  ;;  %vm541_vm14 = vcmp.lt.s32.totalorder %v534_v42, %v501_v0  ;;  %vm543_vm3 = vcmp.lt.s32.totalorder %v536_v31, %v502_v45 }
  0xc2   :  { %vm545_vm5 = vcmp.lt.s32.totalorder %v538_v49, %v503_v50  ;;  %vm547_vm6 = vcmp.lt.s32.totalorder %v540_v3, %v504_v32  ;;  %v542_v53 = vsel %vm541_vm14, %v534_v42, %v501_v0  ;;  %v544_v54 = vsel %vm543_vm3, %v536_v31, %v502_v45  ;;  %v3653_v31 = vld [vmem:[#allocation58_spill] sm:$0xff]  ;;  %v3654_v42 = vld [vmem:[#allocation59_spill] sm:$0xff] }
  0xc3   :  { %v546_v58 = vsel %vm545_vm5, %v538_v49, %v503_v50  ;;  %v548_v61 = vsel %vm547_vm6, %v540_v3, %v504_v32  ;;  %vm549_vm9 = vcmp.lt.s32.totalorder %v542_v53, %v505_v24  ;;  %vm551_vm12 = vcmp.lt.s32.totalorder %v544_v54, %v506_v36 }
  0xc4   :  { %vm553_vm8 = vcmp.lt.s32.totalorder %v546_v58, %v507_v44  ;;  %vm555_vm7 = vcmp.lt.s32.totalorder %v548_v61, %v508_v5  ;;  %v550_v52 = vsel %vm549_vm9, %v542_v53, %v505_v24  ;;  %v552_v13 = vsel %vm551_vm12, %v544_v54, %v506_v36  ;;  %v3666_v53 = vld [vmem:[#allocation42_spill] sm:$0xff] }
  0xc5   :  { %v554_v56 = vsel %vm553_vm8, %v546_v58, %v507_v44  ;;  %v556_v59 = vsel %vm555_vm7, %v548_v61, %v508_v5  ;;  %vm557_vm4 = vcmp.lt.s32.totalorder %v550_v52, %v509_v55  ;;  %vm559_vm0 = vcmp.lt.s32.totalorder %v552_v13, %v510_v16  ;;  %v3668_v58 = vld [vmem:[#allocation37_spill] sm:$0xff] }
  0xc6   :  { %vm561_vm15 = vcmp.lt.s32.totalorder %v554_v56, %v511_v19  ;;  %vm563_vm11 = vcmp.lt.s32.totalorder %v556_v59, %v512_v38  ;;  %v558_v60 = vsel %vm557_vm4, %v550_v52, %v509_v55  ;;  %v560_v46 = vsel %vm559_vm0, %v552_v13, %v510_v16  ;;  %v3670_v52 = vld [vmem:[#allocation44_spill] sm:$0xff] }
  0xc7   :  { %v562_v34 = vsel %vm561_vm15, %v554_v56, %v511_v19  ;;  %v564_v51 = vsel %vm563_vm11, %v556_v59, %v512_v38  ;;  %vm565_vm1 = vcmp.lt.s32.totalorder %v558_v60, %v513_v40  ;;  %vm567_vm10 = vcmp.lt.s32.totalorder %v560_v46, %v514_v62  ;;  %v3672_v56 = vld [vmem:[#allocation40_spill] sm:$0xff] }
  0xc8   :  { %vm569_vm2 = vcmp.lt.s32.totalorder %v562_v34, %v515_v4  ;;  %vm571_vm13 = vcmp.lt.s32.totalorder %v564_v51, %v516_v15  ;;  %v566_v49 = vsel %vm565_vm1, %v558_v60, %v513_v40  ;;  %v568_v3 = vsel %vm567_vm10, %v560_v46, %v514_v62  ;;  %v3674_v60 = vld [vmem:[#allocation65_spill] sm:$0xff]  ;;  %v3675_v46 = vld [vmem:[#allocation66_spill] sm:$0xff] }
  0xc9   :  { %v570_v0 = vsel %vm569_vm2, %v562_v34, %v515_v4  ;;  %v572_v45 = vsel %vm571_vm13, %v564_v51, %v516_v15  ;;  %vm573_vm14 = vcmp.lt.s32.totalorder %v566_v49, %v568_v3  ;;  %v3648_v24 = vrot.slane %v2005_v43, 2  ;;  %v3676_v34 = vld [vmem:[#allocation67_spill] sm:$0xff]  ;;  %v3677_v51 = vld [vmem:[#allocation68_spill] sm:$0xff] }
  0xca   :  { %vm575_vm3 = vcmp.lt.s32.totalorder %v570_v0, %v572_v45  ;;  %v574_v50 = vsel %vm573_vm14, %v566_v49, %v568_v3  ;;  %v3678_v49 = vld [vmem:[#allocation69_spill] sm:$0xff]  ;;  %v3679_v3 = vld [vmem:[#allocation43_spill] sm:$0xff] }
  0xcb   :  { %v576_v32 = vsel %vm575_vm3, %v570_v0, %v572_v45  ;;  %vm448_vm6 = vcmp.lt.s32.totalorder %v2005_v43, %v3648_v24  ;;  %v3649_v5 = vmov %v3648_v24  ;;  %v3681_v45 = vld [vmem:[#allocation45_spill] sm:$0xff]  ;;  %v3684_v24 = vld [vmem:[#allocation70_spill] sm:$0xff] }
  0xcc   :  { %vm577_vm5 = vcmp.lt.s32.totalorder %v574_v50, %v576_v32  ;;  %v449_v55 = vsel %vm448_vm6, %v2005_v43, %v3649_v5  ;;  %v3655_v43 = vld [vmem:[#allocation60_spill] sm:$0xff]  ;;  %v3687_v5 = vld [vmem:[#allocation13_spill] sm:$0xff] }
  0xcd   :  { %v578_v36 = vsel %vm577_vm5, %v574_v50, %v576_v32  ;;  %v450_v38 = vrot.slane %v449_v55, 1 }
  0xce   :  { %v579_v44 = vrot.slane %v578_v36, 4 }
  0xcf   :  { %vm451_vm8 = vcmp.lt.s32.totalorder %v449_v55, %v450_v38 }
  0xd0   :  { %vm580_vm9 = vcmp.lt.s32.totalorder %v578_v36, %v579_v44  ;;  %v452_v15 = vsel %vm451_vm8, %v449_v55, %v450_v38 }
  0xd1   :  { %v581_v16 = vsel %vm580_vm9, %v578_v36, %v579_v44  ;;  %v3685_v36 = vld [vmem:[#allocation71_spill] sm:$0xff]  ;;  %v3686_v44 = vld [vmem:[#allocation72_spill] sm:$0xff] }
  0xd2   :  { %v582_v19 = vrot.slane %v581_v16, 2 }
  0xd4   :  { %vm583_vm12 = vcmp.lt.s32.totalorder %v581_v16, %v582_v19 }
  0xd5   :  { %v584_v40 = vsel %vm583_vm12, %v581_v16, %v582_v19 }
  0xd6   :  { %v585_v62 = vrot.slane %v584_v40, 1 }
  0xd8   :  { %vm586_vm7 = vcmp.lt.s32.totalorder %v584_v40, %v585_v62 }
  0xd9   :  { %v587_v4 = vsel %vm586_vm7, %v584_v40, %v585_v62  ;;  %v3690_v40 = vld [vmem:[#allocation14_spill] sm:$0xff] }
  0xda   :  { %vm588_vm4 = vcmp.lt.s32.totalorder %v452_v15, %v587_v4 }
  0xdb   :  { %v2178_v2 = vsel %vm588_vm4, %v452_v15, %v587_v4  ;;  %v3693_v4 = vld [vmem:[#allocation15_spill] sm:$0xff] }
  0xdc   :  { %3650 = vst [vmem:[#allocation41_spill] sm:$0xff] %v2178_v2  ;;  %vm590_vm0 = vcmp.eq.s32.totalorder %v3515_v1, %v2178_v2  ;;  %vm592_vm15 = vcmp.eq.s32.totalorder %v1370_v17, %v2178_v2  ;;  %vm593_vm11 = vcmp.eq.s32.totalorder %v1373_v25, %v2178_v2  ;;  %vm594_vm1 = vcmp.eq.s32.totalorder %v1376_v27, %v2178_v2  ;;  %v3651_v1 = vld [vmem:[#allocation56_spill] sm:$0xff] }
  0xdd   :  { %v2189_v20 = vsel %vm590_vm0, -inf, %v1685_v11  ;;  %vm595_vm10 = vcmp.eq.s32.totalorder %v1379_v33, %v2178_v2  ;;  %vm596_vm2 = vcmp.eq.s32.totalorder %v1382_v35, %v2178_v2  ;;  %vm597_vm13 = vcmp.eq.s32.totalorder %v1385_v37, %v2178_v2  ;;  %v3652_v11 = vld [vmem:[#allocation57_spill] sm:$0xff] }
  0xde   :  { %vm598_vm14 = vcmp.eq.s32.totalorder %v1388_v39, %v2178_v2  ;;  %vm599_vm3 = vcmp.eq.s32.totalorder %v3607_v28, %v2178_v2  ;;  %vm600_vm5 = vcmp.eq.s32.totalorder %v3608_v47, %v2178_v2  ;;  %vm609_vm9 = vcmp.eq.s32.totalorder %v3651_v1, %v2178_v2  ;;  %v3714_v1 = vld [vmem:[#allocation23_spill] sm:$0xff] }
  0xdf   :  { %vm610_vm12 = vcmp.eq.s32.totalorder %v3652_v11, %v2178_v2  ;;  %vm611_vm8 = vcmp.eq.s32.totalorder %v3653_v31, %v2178_v2  ;;  %vm612_vm7 = vcmp.eq.s32.totalorder %v3654_v42, %v2178_v2  ;;  %vm613_vm4 = vcmp.eq.s32.totalorder %v3655_v43, %v2178_v2  ;;  %v3719_v42 = vld [vmem:[#allocation25_spill] sm:$0xff] }
  0xe0   :  { %vm614_vm0 = vcmp.eq.s32.totalorder %v3656_v48, %v2178_v2  ;;  %vm615_vm6 = vcmp.eq.s32.totalorder %v3657_v10, %v2178_v2  ;;  %v2237_v26 = vsel %vm592_vm15, -inf, %v3658_v14  ;;  %v2243_v23 = vsel %vm593_vm11, -inf, %v3660_v30  ;;  %v3696_v14 = vld [vmem:[#allocation16_spill] sm:$0xff]  ;;  %v3727_v10 = vld [vmem:[#allocation29_spill] sm:$0xff] }
  0xe1   :  { %3659 = vst [vmem:[#allocation62_spill] sm:$0xff] %v2237_v26  ;;  %v2249_v12 = vsel %vm594_vm1, -inf, %v3662_v21  ;;  %v2255_v57 = vsel %vm596_vm2, -inf, %v3664_v7  ;;  %v2261_v54 = vsel %vm595_vm10, -inf, %v3666_v53  ;;  %v2267_v61 = vsel %vm597_vm13, -inf, %v3668_v58  ;;  %v3699_v7 = vld [vmem:[#allocation17_spill] sm:$0xff] }
  0xe2   :  { %3661 = vst [vmem:[#allocation35_spill] sm:$0xff] %v2243_v23  ;;  %v2273_v13 = vsel %vm598_vm14, -inf, %v3670_v52  ;;  %v2279_v59 = vsel %vm599_vm3, -inf, %v3672_v56  ;;  %vm616_vm15 = vcmp.eq.s32.totalorder %v3674_v60, %v2178_v2  ;;  %vm617_vm11 = vcmp.eq.s32.totalorder %v3675_v46, %v2178_v2  ;;  %v3734_v60 = vld [vmem:[#allocation32_spill] sm:$0xff] }
  0xe3   :  { %3663 = vst [vmem:[#allocation36_spill] sm:$0xff] %v2249_v12  ;;  %vm618_vm1 = vcmp.eq.s32.totalorder %v3676_v34, %v2178_v2  ;;  %vm619_vm10 = vcmp.eq.s32.totalorder %v3677_v51, %v2178_v2  ;;  %v2295_v0 = vsel %vm600_vm5, -inf, %v3679_v3  ;;  %vm3682_vm13 = vcmp.eq.s32.totalorder %v3609_v63, %v2178_v2  ;;  %v3702_v3 = vld [vmem:[#allocation18_spill] sm:$0xff]  ;;  %v3736_v51 = vld [vmem:[#allocation33_spill] sm:$0xff] }
  0xe4   :  { %3665 = vst [vmem:[#allocation39_spill] sm:$0xff] %v2255_v57  ;;  %v2301_v50 = vsel %vm3682_vm13, -inf, %v3681_v45  ;;  %v663_v32 = vmax.f32 %v2237_v26, %v2255_v57  ;;  %vm621_vm14 = vcmp.eq.s32.totalorder %v3684_v24, %v2178_v2  ;;  %vm3688_vm5 = vcmp.eq.s32.totalorder %v3611_v29, %v2178_v2 }
  0xe5   :  { %3667 = vst [vmem:[#allocation42_spill] sm:$0xff] %v2261_v54  ;;  %v2315_v55 = vsel %vm3688_vm5, -inf, %v3687_v5  ;;  %v664_v16 = vmax.f32 %v2243_v23, %v2267_v61  ;;  %v665_v19 = vmax.f32 %v2249_v12, %v2273_v13  ;;  %v666_v38 = vmax.f32 %v2261_v54, %v2279_v59  ;;  %v3705_v5 = vld [vmem:[#allocation19_spill] sm:$0xff] }
  0xe6   :  { %3669 = vst [vmem:[#allocation37_spill] sm:$0xff] %v2267_v61  ;;  %vm3691_vm13 = vcmp.eq.s32.totalorder %v3613_v9, %v2178_v2  ;;  %vm3694_vm5 = vcmp.eq.s32.totalorder %v3615_v8, %v2178_v2  ;;  %vm3697_vm2 = vcmp.eq.s32.totalorder %v3617_v41, %v2178_v2  ;;  %v667_v21 = vmax.f32 %v663_v32, %v2295_v0 }
  0xe7   :  { %3671 = vst [vmem:[#allocation44_spill] sm:$0xff] %v2273_v13  ;;  %v2327_v62 = vsel %vm3691_vm13, -inf, %v3690_v40  ;;  %v2333_v15 = vsel %vm3694_vm5, -inf, %v3693_v4  ;;  %v2339_v30 = vsel %vm3697_vm2, -inf, %v3696_v14  ;;  %vm3700_vm3 = vcmp.eq.s32.totalorder %v3619_v22, %v2178_v2  ;;  %v3708_v40 = vld [vmem:[#allocation20_spill] sm:$0xff] }
  0xe8   :  { %3673 = vst [vmem:[#allocation40_spill] sm:$0xff] %v2279_v59  ;;  %v2346_v53 = vsel %vm3700_vm3, -inf, %v3699_v7  ;;  %v668_v58 = vmax.f32 %v664_v16, %v2301_v50  ;;  %v669_v52 = vmax.f32 %v665_v19, %v2315_v55  ;;  %v670_v56 = vmax.f32 %v666_v38, %v2327_v62  ;;  %v3710_v38 = vld [vmem:[#allocation21_spill] sm:$0xff] }
  0xe9   :  { %3680 = vst [vmem:[#allocation43_spill] sm:$0xff] %v2295_v0  ;;  %vm3703_vm13 = vcmp.eq.s32.totalorder %v3621_v18, %v2178_v2  ;;  %vm3706_vm2 = vcmp.eq.s32.totalorder %v3623_v6, %v2178_v2  ;;  %v2367_v16 = vsel %vm609_vm9, -inf, %v3708_v40  ;;  %v671_v19 = vmax.f32 %v667_v21, %v2333_v15  ;;  %v3721_v6 = vld [vmem:[#allocation26_spill] sm:$0xff]  ;;  %v3725_v18 = vld [vmem:[#allocation28_spill] sm:$0xff] }
  0xea   :  { %3683 = vst [vmem:[#allocation45_spill] sm:$0xff] %v2301_v50  ;;  %v2355_v45 = vsel %vm3703_vm13, -inf, %v3702_v3  ;;  %v2361_v32 = vsel %vm3706_vm2, -inf, %v3705_v5  ;;  %v2374_v4 = vsel %vm610_vm12, -inf, %v3710_v38  ;;  %v672_v14 = vmax.f32 %v668_v58, %v2339_v30  ;;  %v3712_v5 = vld [vmem:[#allocation22_spill] sm:$0xff] }
  0xeb   :  { %3689 = vst [vmem:[#allocation13_spill] sm:$0xff] %v2315_v55  ;;  %v673_v7 = vmax.f32 %v669_v52, %v2346_v53  ;;  %v674_v3 = vmax.f32 %v670_v56, %v2355_v45  ;;  %v2383_v40 = vsel %vm611_vm8, -inf, %v3712_v5  ;;  %v2389_v21 = vsel %vm612_vm7, -inf, %v3714_v1  ;;  %v3717_v52 = vld [vmem:[#allocation24_spill] sm:$0xff] }
  0xec   :  { %3692 = vst [vmem:[#allocation14_spill] sm:$0xff] %v2327_v62  ;;  %vm3716_vm9 = vcmask 1043456   ;;  %v675_v58 = vmax.f32 %v671_v19, %v2361_v32  ;;  %v2398_v56 = vsel %vm613_vm4, -inf, %v3717_v52  ;;  %v676_v5 = vmax.f32 %v672_v14, %v2367_v16  ;;  %v3723_v52 = vld [vmem:[#allocation27_spill] sm:$0xff] }
  0xed   :  { %3695 = vst [vmem:[#allocation15_spill] sm:$0xff] %v2333_v15  ;;  %v656_v38 = vsel %vm3716_vm9, %v2189_v20, -inf  ;;  %v677_v31 = vmax.f32 %v673_v7, %v2374_v4  ;;  %v678_v11 = vmax.f32 %v674_v3, %v2383_v40  ;;  %v2407_v1 = vsel %vm614_vm0, -inf, %v3719_v42  ;;  %vm3742_vm0 = vmmov %vm3716_vm9 }
  0xee   :  { %3698 = vst [vmem:[#allocation16_spill] sm:$0xff] %v2339_v30  ;;  %v2413_v19 = vsel %vm615_vm6, -inf, %v3721_v6  ;;  %v2419_v14 = vsel %vm616_vm15, -inf, %v3723_v52  ;;  %v679_v7 = vmax.f32 %v675_v58, %v2389_v21  ;;  %v657_v3 = vrot.slane %v656_v38, 4  ;;  %v3729_v58 = vld [vmem:[#allocation30_spill] sm:$0xff] }
  0xef   :  { %3701 = vst [vmem:[#allocation17_spill] sm:$0xff] %v2346_v53  ;;  %v680_v43 = vmax.f32 %v676_v5, %v2398_v56  ;;  %v681_v42 = vmax.f32 %v677_v31, %v2407_v1  ;;  %v682_v48 = vmax.f32 %v678_v11, %v2413_v19  ;;  %v2429_v6 = vsel %vm617_vm11, -inf, %v3725_v18  ;;  %v3731_v31 = vld [vmem:[#allocation31_spill] sm:$0xff] }
  0xf0   :  { %3704 = vst [vmem:[#allocation18_spill] sm:$0xff] %v2355_v45  ;;  %v2435_v52 = vsel %vm618_vm1, -inf, %v3727_v10  ;;  %v2441_v5 = vsel %vm619_vm10, -inf, %v3729_v58  ;;  %v683_v11 = vmax.f32 %v679_v7, %v2419_v14  ;;  %vm3732_vm6 = vcmp.eq.s32.totalorder %v3678_v49, %v2178_v2 }
  0xf1   :  { %3707 = vst [vmem:[#allocation19_spill] sm:$0xff] %v2361_v32  ;;  %v2448_v18 = vsel %vm3732_vm6, -inf, %v3731_v31  ;;  %v684_v46 = vmax.f32 %v680_v43, %v2429_v6  ;;  %v685_v34 = vmax.f32 %v681_v42, %v2435_v52  ;;  %v686_v10 = vmax.f32 %v682_v48, %v2441_v5  ;;  %v3739_v31 = vld [vmem:[#allocation34_spill] sm:$0xff] }
  0xf2   :  { %3709 = vst [vmem:[#allocation20_spill] sm:$0xff] %v2367_v16  ;;  %v2457_v58 = vsel %vm621_vm14, -inf, %v3734_v60  ;;  %vm3737_vm12 = vcmp.eq.s32.totalorder %v3685_v36, %v2178_v2  ;;  %vm3740_vm8 = vcmp.eq.s32.totalorder %v3686_v44, %v2178_v2  ;;  %v687_v48 = vmax.f32 %v683_v11, %v2448_v18 }
  0xf3   :  { %3711 = vst [vmem:[#allocation21_spill] sm:$0xff] %v2374_v4  ;;  %v2463_v7 = vsel %vm3737_vm12, -inf, %v3736_v51  ;;  %v2469_v43 = vsel %vm3740_vm8, -inf, %v3739_v31  ;;  %v658_v42 = vmax.f32 %v656_v38, %v657_v3  ;;  %v688_v49 = vmax.f32 %v684_v46, %v2457_v58  ;;  %v2479_v46 = vld [vmem:[#allocation3] sm:$0xf] }
  0xf4   :  { %3713 = vst [vmem:[#allocation22_spill] sm:$0xff] %v2383_v40  ;;  %v689_v60 = vmax.f32 %v685_v34, %v2463_v7  ;;  %v690_v24 = vmax.f32 %v686_v10, %v2469_v43  ;;  %v3743_v3 = vld [vmem:[#allocation47_spill] sm:$0xff] }
  0xf5   :  { %3715 = vst [vmem:[#allocation23_spill] sm:$0xff] %v2389_v21  ;;  %v691_v22 = vmax.f32 %v687_v48, %v688_v49  ;;  %v659_v36 = vrot.slane %v658_v42, 2  ;;  %v3744_v48 = vld [vmem:[#allocation48_spill] sm:$0xff] }
  0xf6   :  { %3718 = vst [vmem:[#allocation24_spill] sm:$0xff] %v2398_v56  ;;  %v692_v41 = vmax.f32 %v689_v60, %v690_v24  ;;  %v3746_v60 = vld [vmem:[#allocation49_spill] sm:$0xff] }
  0xf7   :  { %3720 = vst [vmem:[#allocation25_spill] sm:$0xff] %v2407_v1  ;;  %v660_v9 = vmax.f32 %v658_v42, %v659_v36 }
  0xf8   :  { %3722 = vst [vmem:[#allocation26_spill] sm:$0xff] %v2413_v19  ;;  %v693_v51 = vmax.f32 %v691_v22, %v692_v41 }
  0xf9   :  { %3724 = vst [vmem:[#allocation27_spill] sm:$0xff] %v2419_v14  ;;  %v661_v2 = vrot.slane %v660_v9, 1 }
  0xfa   :  { %3726 = vst [vmem:[#allocation28_spill] sm:$0xff] %v2429_v6  ;;  %v694_v8 = vrot.slane %v693_v51, 4 }
  0xfb   :  { %3728 = vst [vmem:[#allocation29_spill] sm:$0xff] %v2435_v52  ;;  %v662_v47 = vmax.f32 %v660_v9, %v661_v2 }
  0xfc   :  { %3730 = vst [vmem:[#allocation30_spill] sm:$0xff] %v2441_v5  ;;  %v695_v29 = vmax.f32 %v693_v51, %v694_v8 }
  0xfd   :  { %3733 = vst [vmem:[#allocation31_spill] sm:$0xff] %v2448_v18 }
  0xfe   :  { %3735 = vst [vmem:[#allocation32_spill] sm:$0xff] %v2457_v58  ;;  %v696_v63 = vrot.slane %v695_v29, 2 }
  0xff   :  { %3738 = vst [vmem:[#allocation33_spill] sm:$0xff] %v2463_v7 }
 0x100   :  { %3741 = vst [vmem:[#allocation34_spill] sm:$0xff] %v2469_v43  ;;  %v697_v31 = vmax.f32 %v695_v29, %v696_v63 }
 0x102   :  { %v698_v44 = vrot.slane %v697_v31, 1 }
 0x104   :  { %v699_v11 = vmax.f32 %v697_v31, %v698_v44  ;;  %v3748_v31 = vld [vmem:[#allocation50_spill] sm:$0xff] }
 0x106   :  { %v2475_v38 = vmax.f32 %v662_v47, %v699_v11 }
 0x108   :  { %vm701_vm7 = vcmp.eq.f32.partialorder %v2189_v20, %v2475_v38  ;;  %vm713_vm4 = vcmp.eq.f32.partialorder %v2237_v26, %v2475_v38  ;;  %vm714_vm15 = vcmp.eq.f32.partialorder %v2243_v23, %v2475_v38  ;;  %vm715_vm11 = vcmp.eq.f32.partialorder %v2249_v12, %v2475_v38  ;;  %v3768_v12 = vld [vmem:[#allocation60_spill] sm:$0xff]  ;;  %v3770_v23 = vld [vmem:[#allocation61_spill] sm:$0xff] }
 0x109   :  { %v702_v34 = vsel %vm701_vm7, %v2479_v46, 1073741824  ;;  %vm716_vm1 = vcmp.eq.f32.partialorder %v2261_v54, %v2475_v38  ;;  %vm717_vm10 = vcmp.eq.f32.partialorder %v2255_v57, %v2475_v38  ;;  %vm718_vm14 = vcmp.eq.f32.partialorder %v2267_v61, %v2475_v38  ;;  %v3762_v61 = vld [vmem:[#allocation57_spill] sm:$0xff]  ;;  %v3764_v54 = vld [vmem:[#allocation58_spill] sm:$0xff]  ;;  %v3766_v57 = vld [vmem:[#allocation59_spill] sm:$0xff] }
 0x10a   :  { %v703_v22 = vsel %vm3742_vm0, %v702_v34, 2147483647  ;;  %vm719_vm3 = vcmp.eq.f32.partialorder %v2273_v13, %v2475_v38  ;;  %vm720_vm5 = vcmp.eq.f32.partialorder %v2279_v59, %v2475_v38  ;;  %vm721_vm13 = vcmp.eq.f32.partialorder %v2295_v0, %v2475_v38  ;;  %v3750_v34 = vld [vmem:[#allocation51_spill] sm:$0xff]  ;;  %v3756_v0 = vld [vmem:[#allocation54_spill] sm:$0xff]  ;;  %v3760_v13 = vld [vmem:[#allocation56_spill] sm:$0xff] }
 0x10b   :  { %v704_v47 = vrot.slane %v703_v22, 4  ;;  %vm738_vm7 = vcmp.eq.f32.partialorder %v2429_v6, %v2475_v38  ;;  %vm740_vm0 = vcmp.eq.f32.partialorder %v2441_v5, %v2475_v38  ;;  %vm741_vm2 = vcmp.eq.f32.partialorder %v2448_v18, %v2475_v38  ;;  %v3758_v59 = vld [vmem:[#allocation55_spill] sm:$0xff]  ;;  %v3772_v26 = vld [vmem:[#allocation64_spill] sm:$0xff] }
 0x10c   :  { %vm742_vm9 = vcmp.eq.f32.partialorder %v2457_v58, %v2475_v38  ;;  %vm743_vm12 = vcmp.eq.f32.partialorder %v2463_v7, %v2475_v38  ;;  %vm744_vm8 = vcmp.eq.f32.partialorder %v2469_v43, %v2475_v38  ;;  %v745_v9 = vsel %vm713_vm4, %v1370_v17, 1073741824 }
 0x10d   :  { %vm705_vm6 = vcmp.lt.s32.totalorder %v703_v22, %v704_v47  ;;  %v746_v8 = vsel %vm714_vm15, %v1373_v25, 1073741824  ;;  %v747_v41 = vsel %vm715_vm11, %v1376_v27, 1073741824  ;;  %v748_v2 = vsel %vm716_vm1, %v1379_v33, 1073741824 }
 0x10e   :  { %v2511_v63 = vsel %vm705_vm6, %v703_v22, %v704_v47  ;;  %vm739_vm6 = vcmp.eq.f32.partialorder %v2435_v52, %v2475_v38  ;;  %v749_v49 = vsel %vm717_vm10, %v1382_v35, 1073741824  ;;  %v750_v24 = vsel %vm718_vm14, %v1385_v37, 1073741824  ;;  %v3752_v47 = vld [vmem:[#allocation52_spill] sm:$0xff] }
 0x10f   :  { %v751_v36 = vsel %vm719_vm3, %v1388_v39, 1073741824  ;;  %v752_v44 = vsel %vm720_vm5, %v3607_v28, 1073741824  ;;  %v753_v10 = vsel %vm721_vm13, %v3743_v3, 1073741824  ;;  %vm3745_vm4 = vcmp.eq.f32.partialorder %v2301_v50, %v2475_v38  ;;  %v3754_v50 = vld [vmem:[#allocation53_spill] sm:$0xff] }
 0x110   :  { %v754_v42 = vsel %vm3745_vm4, %v3744_v48, 1073741824  ;;  %vm3747_vm15 = vcmp.eq.f32.partialorder %v2315_v55, %v2475_v38  ;;  %vm3749_vm11 = vcmp.eq.f32.partialorder %v2327_v62, %v2475_v38  ;;  %vm3751_vm1 = vcmp.eq.f32.partialorder %v2333_v15, %v2475_v38 }
 0x111   :  { %v755_v51 = vsel %vm3747_vm15, %v3746_v60, 1073741824  ;;  %v756_v11 = vsel %vm3749_vm11, %v3748_v31, 1073741824  ;;  %v757_v22 = vsel %vm3751_vm1, %v3750_v34, 1073741824  ;;  %vm3753_vm10 = vcmp.eq.f32.partialorder %v2339_v30, %v2475_v38 }
 0x112   :  { %v758_v29 = vsel %vm3753_vm10, %v3752_v47, 1073741824  ;;  %vm3755_vm14 = vcmp.eq.f32.partialorder %v2346_v53, %v2475_v38  ;;  %vm3757_vm3 = vcmp.eq.f32.partialorder %v2355_v45, %v2475_v38  ;;  %vm3759_vm5 = vcmp.eq.f32.partialorder %v2361_v32, %v2475_v38 }
 0x113   :  { %v759_v55 = vsel %vm3755_vm14, %v3754_v50, 1073741824  ;;  %v760_v62 = vsel %vm3757_vm3, %v3756_v0, 1073741824  ;;  %v761_v15 = vsel %vm3759_vm5, %v3758_v59, 1073741824  ;;  %vm3761_vm13 = vcmp.eq.f32.partialorder %v2367_v16, %v2475_v38 }
 0x114   :  { %v762_v30 = vsel %vm3761_vm13, %v3760_v13, 1073741824  ;;  %vm3763_vm4 = vcmp.eq.f32.partialorder %v2374_v4, %v2475_v38  ;;  %vm3765_vm15 = vcmp.eq.f32.partialorder %v2383_v40, %v2475_v38  ;;  %vm3767_vm11 = vcmp.eq.f32.partialorder %v2389_v21, %v2475_v38 }
 0x115   :  { %v763_v53 = vsel %vm3763_vm4, %v3762_v61, 1073741824  ;;  %v764_v45 = vsel %vm3765_vm15, %v3764_v54, 1073741824  ;;  %v765_v32 = vsel %vm3767_vm11, %v3766_v57, 1073741824  ;;  %vm3769_vm1 = vcmp.eq.f32.partialorder %v2398_v56, %v2475_v38  ;;  %v3774_v54 = vld [vmem:[#allocation65_spill] sm:$0xff]  ;;  %v3776_v57 = vld [vmem:[#allocation66_spill] sm:$0xff] }
 0x116   :  { %v766_v16 = vsel %vm3769_vm1, %v3768_v12, 1073741824  ;;  %vm3771_vm10 = vcmp.eq.f32.partialorder %v2407_v1, %v2475_v38  ;;  %vm3773_vm14 = vcmp.eq.f32.partialorder %v2413_v19, %v2475_v38  ;;  %vm3775_vm3 = vcmp.eq.f32.partialorder %v2419_v14, %v2475_v38  ;;  %v3777_v12 = vld [vmem:[#allocation67_spill] sm:$0xff] }
 0x117   :  { %v767_v4 = vsel %vm3771_vm10, %v3770_v23, 1073741824  ;;  %v768_v40 = vsel %vm3773_vm14, %v3772_v26, 1073741824  ;;  %v769_v21 = vsel %vm3775_vm3, %v3774_v54, 1073741824  ;;  %v770_v56 = vsel %vm738_vm7, %v3776_v57, 1073741824  ;;  %v3778_v23 = vld [vmem:[#allocation68_spill] sm:$0xff]  ;;  %v3779_v26 = vld [vmem:[#allocation69_spill] sm:$0xff] }
 0x118   :  { %v771_v1 = vsel %vm739_vm6, %v3777_v12, 1073741824  ;;  %v772_v19 = vsel %vm740_vm0, %v3778_v23, 1073741824  ;;  %v773_v14 = vsel %vm741_vm2, %v3779_v26, 1073741824  ;;  %v3780_v54 = vld [vmem:[#allocation70_spill] sm:$0xff]  ;;  %v3781_v57 = vld [vmem:[#allocation71_spill] sm:$0xff]  ;;  %v3782_v12 = vld [vmem:[#allocation72_spill] sm:$0xff]  ;;  %vm777_vm7 = vcmp.lt.s32.totalorder %v745_v9, %v749_v49 }
 0x119   :  { %v774_v6 = vsel %vm742_vm9, %v3780_v54, 1073741824  ;;  %v775_v52 = vsel %vm743_vm12, %v3781_v57, 1073741824  ;;  %v776_v5 = vsel %vm744_vm8, %v3782_v12, 1073741824  ;;  %vm779_vm0 = vcmp.lt.s32.totalorder %v746_v8, %v750_v24 }
 0x11a   :  { %vm781_vm6 = vcmp.lt.s32.totalorder %v747_v41, %v751_v36  ;;  %vm783_vm5 = vcmp.lt.s32.totalorder %v748_v2, %v752_v44  ;;  %v778_v18 = vsel %vm777_vm7, %v745_v9, %v749_v49  ;;  %v780_v26 = vsel %vm779_vm0, %v746_v8, %v750_v24  ;;  %v3789_v24 = vld [vmem:[#allocation73_spill] sm:$0xff] }
 0x11b   :  { %v782_v23 = vsel %vm781_vm6, %v747_v41, %v751_v36  ;;  %v784_v61 = vsel %vm783_vm5, %v748_v2, %v752_v44  ;;  %vm785_vm2 = vcmp.lt.s32.totalorder %v778_v18, %v753_v10  ;;  %vm787_vm9 = vcmp.lt.s32.totalorder %v780_v26, %v754_v42 }
 0x11c   :  { %vm789_vm13 = vcmp.lt.s32.totalorder %v782_v23, %v755_v51  ;;  %vm791_vm4 = vcmp.lt.s32.totalorder %v784_v61, %v756_v11  ;;  %v786_v58 = vsel %vm785_vm2, %v778_v18, %v753_v10  ;;  %v788_v7 = vsel %vm787_vm9, %v780_v26, %v754_v42  ;;  %v3791_v10 = vld [vmem:[#allocation57_spill] sm:$0xff]  ;;  %v3792_v42 = vld [vmem:[#allocation58_spill] sm:$0xff] }
 0x11d   :  { %v790_v57 = vsel %vm789_vm13, %v782_v23, %v755_v51  ;;  %v792_v54 = vsel %vm791_vm4, %v784_v61, %v756_v11  ;;  %vm1110_vm12 = vcmask 1040384   ;;  %vm793_vm15 = vcmp.lt.s32.totalorder %v786_v58, %v757_v22  ;;  %v3793_v51 = vld [vmem:[#allocation59_spill] sm:$0xff]  ;;  %v3794_v11 = vld [vmem:[#allocation60_spill] sm:$0xff] }
 0x11e   :  { %vm795_vm11 = vcmp.lt.s32.totalorder %v788_v7, %v758_v29  ;;  %vm797_vm8 = vcmp.lt.s32.totalorder %v790_v57, %v759_v55  ;;  %vm799_vm1 = vcmp.lt.s32.totalorder %v792_v54, %v760_v62  ;;  %v794_v43 = vsel %vm793_vm15, %v786_v58, %v757_v22  ;;  %v3795_v22 = vld [vmem:[#allocation61_spill] sm:$0xff] }
 0x11f   :  { %v796_v12 = vsel %vm795_vm11, %v788_v7, %v758_v29  ;;  %v798_v13 = vsel %vm797_vm8, %v790_v57, %v759_v55  ;;  %v800_v9 = vsel %vm799_vm1, %v792_v54, %v760_v62  ;;  %vm801_vm10 = vcmp.lt.s32.totalorder %v794_v43, %v761_v15 }
 0x120   :  { %vm803_vm14 = vcmp.lt.s32.totalorder %v796_v12, %v762_v30  ;;  %vm805_vm3 = vcmp.lt.s32.totalorder %v798_v13, %v763_v53  ;;  %vm807_vm7 = vcmp.lt.s32.totalorder %v800_v9, %v764_v45  ;;  %v802_v8 = vsel %vm801_vm10, %v794_v43, %v761_v15 }
 0x121   :  { %v804_v41 = vsel %vm803_vm14, %v796_v12, %v762_v30  ;;  %v806_v2 = vsel %vm805_vm3, %v798_v13, %v763_v53  ;;  %v808_v18 = vsel %vm807_vm7, %v800_v9, %v764_v45  ;;  %vm809_vm0 = vcmp.lt.s32.totalorder %v802_v8, %v765_v32  ;;  %v3783_v53 = vld [vmem:[#allocation38_spill] sm:$0xff]  ;;  %v3784_v45 = vld [vmem:[#allocation63_spill] sm:$0xff]  ;;  %v3796_v9 = vld [vmem:[#allocation64_spill] sm:$0xff] }
 0x122   :  { %vm811_vm6 = vcmp.lt.s32.totalorder %v804_v41, %v766_v16  ;;  %vm813_vm5 = vcmp.lt.s32.totalorder %v806_v2, %v767_v4  ;;  %vm815_vm2 = vcmp.lt.s32.totalorder %v808_v18, %v768_v40  ;;  %v810_v26 = vsel %vm809_vm0, %v802_v8, %v765_v32  ;;  %v3797_v8 = vld [vmem:[#allocation62_spill] sm:$0xff] }
 0x123   :  { %v812_v23 = vsel %vm811_vm6, %v804_v41, %v766_v16  ;;  %v814_v61 = vsel %vm813_vm5, %v806_v2, %v767_v4  ;;  %v816_v49 = vsel %vm815_vm2, %v808_v18, %v768_v40  ;;  %vm817_vm9 = vcmp.lt.s32.totalorder %v810_v26, %v769_v21  ;;  %v3798_v2 = vld [vmem:[#allocation35_spill] sm:$0xff] }
 0x124   :  { %vm819_vm13 = vcmp.lt.s32.totalorder %v812_v23, %v770_v56  ;;  %vm821_vm4 = vcmp.lt.s32.totalorder %v814_v61, %v771_v1  ;;  %vm823_vm15 = vcmp.lt.s32.totalorder %v816_v49, %v772_v19  ;;  %v818_v57 = vsel %vm817_vm9, %v810_v26, %v769_v21  ;;  %v3799_v26 = vld [vmem:[#allocation36_spill] sm:$0xff] }
 0x125   :  { %v820_v54 = vsel %vm819_vm13, %v812_v23, %v770_v56  ;;  %v822_v55 = vsel %vm821_vm4, %v814_v61, %v771_v1  ;;  %v824_v62 = vsel %vm823_vm15, %v816_v49, %v772_v19  ;;  %vm825_vm11 = vcmp.lt.s32.totalorder %v818_v57, %v773_v14  ;;  %v3800_v61 = vld [vmem:[#allocation39_spill] sm:$0xff] }
 0x126   :  { %vm827_vm8 = vcmp.lt.s32.totalorder %v820_v54, %v774_v6  ;;  %vm829_vm1 = vcmp.lt.s32.totalorder %v822_v55, %v775_v52  ;;  %vm831_vm10 = vcmp.lt.s32.totalorder %v824_v62, %v776_v5  ;;  %v826_v12 = vsel %vm825_vm11, %v818_v57, %v773_v14  ;;  %v3801_v57 = vld [vmem:[#allocation42_spill] sm:$0xff] }
 0x127   :  { %v828_v13 = vsel %vm827_vm8, %v820_v54, %v774_v6  ;;  %v830_v15 = vsel %vm829_vm1, %v822_v55, %v775_v52  ;;  %v832_v30 = vsel %vm831_vm10, %v824_v62, %v776_v5  ;;  %v1111_v32 = vsel %vm1110_vm12, %v3784_v45, %v3783_v53  ;;  %v3802_v55 = vld [vmem:[#allocation37_spill] sm:$0xff]  ;;  %v3806_v45 = vld [vmem:[#allocation66_spill] sm:$0xff] }
 0x128   :  { %vm833_vm14 = vcmp.lt.s32.totalorder %v826_v12, %v828_v13  ;;  %vm835_vm3 = vcmp.lt.s32.totalorder %v830_v15, %v832_v30  ;;  %vm3403_vm7 = vcmask 1041408   ;;  %v3786_v21 = vrot.slane %v2511_v63, 2  ;;  %v3805_v53 = vld [vmem:[#allocation65_spill] sm:$0xff] }
 0x129   :  { %v834_v16 = vsel %vm833_vm14, %v826_v12, %v828_v13  ;;  %v836_v4 = vsel %vm835_vm3, %v830_v15, %v832_v30  ;;  %v2683_v40 = vsel %vm3403_vm7, %v1111_v32, %v2475_v38  ;;  %v3803_v12 = vld [vmem:[#allocation44_spill] sm:$0xff]  ;;  %v3807_v32 = vld [vmem:[#allocation67_spill] sm:$0xff] }
 0x12a   :  { %3785 = vst [vmem:[#allocation38_spill] sm:$0xff] %v2683_v40  ;;  %vm837_vm0 = vcmp.lt.s32.totalorder %v834_v16, %v836_v4  ;;  %vm708_vm6 = vcmp.lt.s32.totalorder %v2511_v63, %v3786_v21  ;;  %v3787_v19 = vmov %v3786_v21  ;;  %v3804_v15 = vld [vmem:[#allocation40_spill] sm:$0xff]  ;;  %v3810_v21 = vld [vmem:[#allocation43_spill] sm:$0xff] }
 0x12b   :  { %v838_v56 = vsel %vm837_vm0, %v834_v16, %v836_v4  ;;  %v709_v14 = vsel %vm708_vm6, %v2511_v63, %v3787_v19  ;;  %v3788_v63 = vld [vmem:[#allocation41_spill] sm:$0xff]  ;;  %v3808_v16 = vld [vmem:[#allocation68_spill] sm:$0xff] }
 0x12c   :  { %v839_v1 = vrot.slane %v838_v56, 4  ;;  %v710_v5 = vrot.slane %v709_v14, 1  ;;  %v1116_v36 = vsel %vm1110_vm12, %v3789_v24, %v3788_v63  ;;  %v3809_v4 = vld [vmem:[#allocation69_spill] sm:$0xff] }
 0x12e   :  { %vm840_vm5 = vcmp.lt.s32.totalorder %v838_v56, %v839_v1  ;;  %vm711_vm9 = vcmp.lt.s32.totalorder %v709_v14, %v710_v5 }
 0x12f   :  { %v841_v6 = vsel %vm840_vm5, %v838_v56, %v839_v1  ;;  %v712_v38 = vsel %vm711_vm9, %v709_v14, %v710_v5  ;;  %v3811_v1 = vld [vmem:[#allocation45_spill] sm:$0xff]  ;;  %v3815_v5 = vld [vmem:[#allocation70_spill] sm:$0xff] }
 0x130   :  { %v842_v52 = vrot.slane %v841_v6, 2  ;;  %v3813_v14 = vld [vmem:[#allocation13_spill] sm:$0xff] }
 0x132   :  { %vm843_vm2 = vcmp.lt.s32.totalorder %v841_v6, %v842_v52 }
 0x133   :  { %v844_v58 = vsel %vm843_vm2, %v841_v6, %v842_v52 }
 0x134   :  { %v845_v7 = vrot.slane %v844_v58, 1 }
 0x136   :  { %vm846_vm13 = vcmp.lt.s32.totalorder %v844_v58, %v845_v7 }
 0x137   :  { %v847_v43 = vsel %vm846_vm13, %v844_v58, %v845_v7  ;;  %v3816_v58 = vld [vmem:[#allocation71_spill] sm:$0xff]  ;;  %v3817_v7 = vld [vmem:[#allocation72_spill] sm:$0xff] }
 0x138   :  { %vm848_vm4 = vcmp.lt.s32.totalorder %v712_v38, %v847_v43 }
 0x139   :  { %v2691_v29 = vsel %vm848_vm4, %v712_v38, %v847_v43  ;;  %v3818_v43 = vld [vmem:[#allocation14_spill] sm:$0xff] }
 0x13a   :  { %vm850_vm15 = vcmp.eq.s32.totalorder %v2479_v46, %v2691_v29  ;;  %vm852_vm11 = vcmp.eq.s32.totalorder %v1370_v17, %v2691_v29  ;;  %vm853_vm8 = vcmp.eq.s32.totalorder %v1373_v25, %v2691_v29  ;;  %vm854_vm1 = vcmp.eq.s32.totalorder %v1376_v27, %v2691_v29 }
 0x13b   :  { %v2705_v44 = vsel %vm850_vm15, -inf, %v2189_v20  ;;  %vm855_vm10 = vcmp.eq.s32.totalorder %v1379_v33, %v2691_v29  ;;  %vm856_vm14 = vcmp.eq.s32.totalorder %v1382_v35, %v2691_v29  ;;  %vm857_vm3 = vcmp.eq.s32.totalorder %v1385_v37, %v2691_v29  ;;  %v3790_v20 = vld [vmem:[#allocation56_spill] sm:$0xff] }
 0x13c   :  { %vm858_vm0 = vcmp.eq.s32.totalorder %v1388_v39, %v2691_v29  ;;  %vm859_vm6 = vcmp.eq.s32.totalorder %v3607_v28, %v2691_v29  ;;  %vm860_vm12 = vcmp.eq.s32.totalorder %v3743_v3, %v2691_v29  ;;  %vm869_vm2 = vcmp.eq.s32.totalorder %v3790_v20, %v2691_v29  ;;  %v3835_v20 = vld [vmem:[#allocation23_spill] sm:$0xff] }
 0x13d   :  { %vm870_vm9 = vcmp.eq.s32.totalorder %v3791_v10, %v2691_v29  ;;  %vm871_vm13 = vcmp.eq.s32.totalorder %v3792_v42, %v2691_v29  ;;  %vm872_vm4 = vcmp.eq.s32.totalorder %v3793_v51, %v2691_v29  ;;  %vm873_vm15 = vcmp.eq.s32.totalorder %v3794_v11, %v2691_v29  ;;  %v3838_v51 = vld [vmem:[#allocation25_spill] sm:$0xff] }
 0x13e   :  { %vm874_vm7 = vcmp.eq.s32.totalorder %v3795_v22, %v2691_v29  ;;  %vm875_vm5 = vcmp.eq.s32.totalorder %v3796_v9, %v2691_v29  ;;  %v2753_v41 = vsel %vm852_vm11, -inf, %v3797_v8  ;;  %v2759_v18 = vsel %vm853_vm8, -inf, %v3798_v2  ;;  %v3820_v2 = vld [vmem:[#allocation15_spill] sm:$0xff]  ;;  %v3842_v9 = vld [vmem:[#allocation29_spill] sm:$0xff] }
 0x13f   :  { %v2765_v23 = vsel %vm854_vm1, -inf, %v3799_v26  ;;  %v2771_v49 = vsel %vm856_vm14, -inf, %v3800_v61  ;;  %v2777_v54 = vsel %vm855_vm10, -inf, %v3801_v57  ;;  %v2783_v62 = vsel %vm857_vm3, -inf, %v3802_v55  ;;  %v3822_v61 = vld [vmem:[#allocation16_spill] sm:$0xff] }
 0x140   :  { %v2789_v13 = vsel %vm858_vm0, -inf, %v3803_v12  ;;  %v2795_v30 = vsel %vm859_vm6, -inf, %v3804_v15  ;;  %vm876_vm11 = vcmp.eq.s32.totalorder %v3805_v53, %v2691_v29  ;;  %vm877_vm8 = vcmp.eq.s32.totalorder %v3806_v45, %v2691_v29  ;;  %v3826_v15 = vld [vmem:[#allocation17_spill] sm:$0xff]  ;;  %v3846_v53 = vld [vmem:[#allocation32_spill] sm:$0xff] }
 0x141   :  { %vm878_vm1 = vcmp.eq.s32.totalorder %v3807_v32, %v2691_v29  ;;  %vm879_vm10 = vcmp.eq.s32.totalorder %v3808_v16, %v2691_v29  ;;  %v2811_v56 = vsel %vm860_vm12, -inf, %v3810_v21  ;;  %vm3812_vm3 = vcmp.eq.s32.totalorder %v3744_v48, %v2691_v29  ;;  %v3847_v16 = vld [vmem:[#allocation33_spill] sm:$0xff] }
 0x142   :  { %v2817_v19 = vsel %vm3812_vm3, -inf, %v3811_v1  ;;  %vm3814_vm0 = vcmp.eq.s32.totalorder %v3746_v60, %v2691_v29  ;;  %v923_v52 = vmax.f32 %v2753_v41, %v2771_v49  ;;  %vm881_vm6 = vcmp.eq.s32.totalorder %v3815_v5, %v2691_v29 }
 0x143   :  { %v2823_v6 = vsel %vm3814_vm0, -inf, %v3813_v14  ;;  %vm3819_vm3 = vcmp.eq.s32.totalorder %v3748_v31, %v2691_v29  ;;  %v924_v63 = vmax.f32 %v2759_v18, %v2783_v62  ;;  %v925_v24 = vmax.f32 %v2765_v23, %v2789_v13 }
 0x144   :  { %v2837_v38 = vsel %vm3819_vm3, -inf, %v3818_v43  ;;  %v926_v8 = vmax.f32 %v2777_v54, %v2795_v30  ;;  %vm3821_vm0 = vcmp.eq.s32.totalorder %v3750_v34, %v2691_v29  ;;  %vm3823_vm3 = vcmp.eq.s32.totalorder %v3752_v47, %v2691_v29 }
 0x145   :  { %v2849_v26 = vsel %vm3821_vm0, -inf, %v3820_v2  ;;  %v2855_v57 = vsel %vm3823_vm3, -inf, %v3822_v61  ;;  %v927_v55 = vmax.f32 %v923_v52, %v2811_v56  ;;  %vm3824_vm14 = vcmask 1041408   ;;  %v3828_v2 = vld [vmem:[#allocation18_spill] sm:$0xff] }
 0x146   :  { %v2860_v12 = vsel %vm3824_vm14, %v1116_v36, %v2691_v29  ;;  %vm3827_vm12 = vcmp.eq.s32.totalorder %v3754_v50, %v2691_v29  ;;  %v928_v1 = vmax.f32 %v924_v63, %v2817_v19  ;;  %v929_v14 = vmax.f32 %v925_v24, %v2823_v6  ;;  %v3830_v36 = vld [vmem:[#allocation19_spill] sm:$0xff]  ;;  %v3841_v50 = vld [vmem:[#allocation28_spill] sm:$0xff] }
 0x147   :  { %3825 = vst [vmem:[#allocation63_spill] sm:$0xff] %v2860_v12  ;;  %v2866_v21 = vsel %vm3827_vm12, -inf, %v3826_v15  ;;  %v930_v43 = vmax.f32 %v926_v8, %v2837_v38  ;;  %vm3829_vm0 = vcmp.eq.s32.totalorder %v3756_v0, %v2691_v29  ;;  %vm3831_vm14 = vcmp.eq.s32.totalorder %v3758_v59, %v2691_v29  ;;  %v3832_v15 = vld [vmem:[#allocation20_spill] sm:$0xff]  ;;  %v3833_v8 = vld [vmem:[#allocation21_spill] sm:$0xff]  ;;  %v3834_v59 = vld [vmem:[#allocation22_spill] sm:$0xff] }
 0x148   :  { %v2875_v52 = vsel %vm3829_vm0, -inf, %v3828_v2  ;;  %v2881_v61 = vsel %vm3831_vm14, -inf, %v3830_v36  ;;  %v2887_v63 = vsel %vm869_vm2, -inf, %v3832_v15  ;;  %v931_v24 = vmax.f32 %v927_v55, %v2849_v26  ;;  %v3839_v0 = vld [vmem:[#allocation26_spill] sm:$0xff] }
 0x149   :  { %v2894_v2 = vsel %vm870_vm9, -inf, %v3833_v8  ;;  %v932_v12 = vmax.f32 %v928_v1, %v2855_v57  ;;  %v933_v40 = vmax.f32 %v929_v14, %v2866_v21  ;;  %v934_v36 = vmax.f32 %v930_v43, %v2875_v52  ;;  %v3837_v14 = vld [vmem:[#allocation24_spill] sm:$0xff] }
 0x14a   :  { %v2903_v15 = vsel %vm871_vm13, -inf, %v3834_v59  ;;  %v2909_v55 = vsel %vm872_vm4, -inf, %v3835_v20  ;;  %vm3836_vm2 = vcmask 1043456   ;;  %v935_v1 = vmax.f32 %v931_v24, %v2881_v61 }
 0x14b   :  { %v916_v8 = vsel %vm3836_vm2, %v2705_v44, -inf  ;;  %v2918_v43 = vsel %vm873_vm15, -inf, %v3837_v14  ;;  %v936_v59 = vmax.f32 %v932_v12, %v2887_v63  ;;  %v937_v42 = vmax.f32 %v933_v40, %v2894_v2  ;;  %v3840_v14 = vld [vmem:[#allocation27_spill] sm:$0xff]  ;;  %vm3851_vm15 = vmmov %vm3836_vm2 }
 0x14c   :  { %v938_v10 = vmax.f32 %v934_v36, %v2903_v15  ;;  %v2927_v20 = vsel %vm874_vm7, -inf, %v3838_v51  ;;  %v2933_v24 = vsel %vm875_vm5, -inf, %v3839_v0  ;;  %v2939_v12 = vsel %vm876_vm11, -inf, %v3840_v14 }
 0x14d   :  { %v939_v40 = vmax.f32 %v935_v1, %v2909_v55  ;;  %v917_v36 = vrot.slane %v916_v8, 4  ;;  %v940_v11 = vmax.f32 %v936_v59, %v2918_v43  ;;  %v941_v51 = vmax.f32 %v937_v42, %v2927_v20  ;;  %v3843_v1 = vld [vmem:[#allocation30_spill] sm:$0xff]  ;;  %v3844_v42 = vld [vmem:[#allocation31_spill] sm:$0xff] }
 0x14e   :  { %v942_v22 = vmax.f32 %v938_v10, %v2933_v24  ;;  %v2949_v0 = vsel %vm877_vm8, -inf, %v3841_v50  ;;  %v2955_v14 = vsel %vm878_vm1, -inf, %v3842_v9  ;;  %v2961_v59 = vsel %vm879_vm10, -inf, %v3843_v1 }
 0x14f   :  { %v943_v10 = vmax.f32 %v939_v40, %v2939_v12  ;;  %vm3845_vm7 = vcmp.eq.s32.totalorder %v3809_v4, %v2691_v29  ;;  %v944_v45 = vmax.f32 %v940_v11, %v2949_v0  ;;  %v945_v32 = vmax.f32 %v941_v51, %v2955_v14 }
 0x150   :  { %v2968_v50 = vsel %vm3845_vm7, -inf, %v3844_v42  ;;  %v946_v9 = vmax.f32 %v942_v22, %v2961_v59  ;;  %v2977_v1 = vsel %vm881_vm6, -inf, %v3846_v53  ;;  %vm3848_vm5 = vcmp.eq.s32.totalorder %v3816_v58, %v2691_v29  ;;  %v3849_v42 = vld [vmem:[#allocation34_spill] sm:$0xff] }
 0x151   :  { %v2983_v40 = vsel %vm3848_vm5, -inf, %v3847_v16  ;;  %vm3850_vm9 = vcmp.eq.s32.totalorder %v3817_v7, %v2691_v29  ;;  %v947_v22 = vmax.f32 %v943_v10, %v2968_v50  ;;  %v918_v51 = vmax.f32 %v916_v8, %v917_v36  ;;  %v3876_v36 = vld [vmem:[#allocation59_spill] sm:$0xff] }
 0x152   :  { %v2989_v11 = vsel %vm3850_vm9, -inf, %v3849_v42  ;;  %v948_v4 = vmax.f32 %v944_v45, %v2977_v1  ;;  %v949_v53 = vmax.f32 %v945_v32, %v2983_v40 }
 0x153   :  { %v950_v5 = vmax.f32 %v946_v9, %v2989_v11  ;;  %v919_v58 = vrot.slane %v918_v51, 2  ;;  %v3878_v9 = vld [vmem:[#allocation60_spill] sm:$0xff] }
 0x154   :  { %v951_v47 = vmax.f32 %v947_v22, %v948_v4  ;;  %v3864_v4 = vld [vmem:[#allocation53_spill] sm:$0xff] }
 0x155   :  { %v952_v34 = vmax.f32 %v949_v53, %v950_v5  ;;  %v920_v60 = vmax.f32 %v918_v51, %v919_v58  ;;  %v3868_v5 = vld [vmem:[#allocation55_spill] sm:$0xff]  ;;  %v3880_v22 = vld [vmem:[#allocation61_spill] sm:$0xff]  ;;  %v3882_v51 = vld [vmem:[#allocation64_spill] sm:$0xff] }
 0x156   :  { %v3884_v53 = vld [vmem:[#allocation65_spill] sm:$0xff] }
 0x157   :  { %v953_v16 = vmax.f32 %v951_v47, %v952_v34  ;;  %v921_v29 = vrot.slane %v920_v60, 1 }
 0x159   :  { %v954_v31 = vrot.slane %v953_v16, 4  ;;  %v922_v28 = vmax.f32 %v920_v60, %v921_v29  ;;  %v3887_v29 = vld [vmem:[#allocation67_spill] sm:$0xff] }
 0x15b   :  { %v955_v48 = vmax.f32 %v953_v16, %v954_v31  ;;  %v3886_v16 = vld [vmem:[#allocation66_spill] sm:$0xff] }
 0x15d   :  { %v956_v3 = vrot.slane %v955_v48, 2 }
 0x15f   :  { %v957_v42 = vmax.f32 %v955_v48, %v956_v3 }
 0x161   :  { %v958_v7 = vrot.slane %v957_v42, 1 }
 0x163   :  { %v959_v10 = vmax.f32 %v957_v42, %v958_v7  ;;  %v3870_v7 = vld [vmem:[#allocation56_spill] sm:$0xff] }
 0x164   :  { %v3888_v42 = vld [vmem:[#allocation68_spill] sm:$0xff] }
 0x165   :  { %v2995_v8 = vmax.f32 %v922_v28, %v959_v10  ;;  %v3889_v10 = vld [vmem:[#allocation69_spill] sm:$0xff] }
 0x167   :  { %vm961_vm13 = vcmp.eq.f32.partialorder %v2705_v44, %v2995_v8  ;;  %vm973_vm4 = vcmp.eq.f32.partialorder %v2753_v41, %v2995_v8  ;;  %vm974_vm11 = vcmp.eq.f32.partialorder %v2759_v18, %v2995_v8  ;;  %vm975_vm8 = vcmp.eq.f32.partialorder %v2765_v23, %v2995_v8  ;;  %v3852_v44 = vld [vmem:[#allocation46_spill] sm:$0xff]  ;;  %v3853_v41 = vld [vmem:[#allocation47_spill] sm:$0xff]  ;;  %v3854_v18 = vld [vmem:[#allocation48_spill] sm:$0xff] }
 0x168   :  { %v962_v45 = vsel %vm961_vm13, %v2479_v46, 1073741824  ;;  %vm976_vm1 = vcmp.eq.f32.partialorder %v2777_v54, %v2995_v8  ;;  %vm977_vm10 = vcmp.eq.f32.partialorder %v2771_v49, %v2995_v8  ;;  %vm978_vm6 = vcmp.eq.f32.partialorder %v2783_v62, %v2995_v8  ;;  %v3856_v23 = vld [vmem:[#allocation49_spill] sm:$0xff]  ;;  %v3858_v49 = vld [vmem:[#allocation50_spill] sm:$0xff]  ;;  %v3860_v62 = vld [vmem:[#allocation51_spill] sm:$0xff] }
 0x169   :  { %v963_v34 = vsel %vm3851_vm15, %v962_v45, 2147483647  ;;  %vm979_vm12 = vcmp.eq.f32.partialorder %v2789_v13, %v2995_v8  ;;  %vm980_vm3 = vcmp.eq.f32.partialorder %v2795_v30, %v2995_v8  ;;  %vm981_vm0 = vcmp.eq.f32.partialorder %v2811_v56, %v2995_v8  ;;  %v3862_v30 = vld [vmem:[#allocation52_spill] sm:$0xff]  ;;  %v3890_v45 = vld [vmem:[#allocation70_spill] sm:$0xff] }
 0x16a   :  { %v964_v28 = vrot.slane %v963_v34, 4  ;;  %vm998_vm13 = vcmp.eq.f32.partialorder %v2949_v0, %v2995_v8  ;;  %vm1000_vm15 = vcmp.eq.f32.partialorder %v2961_v59, %v2995_v8  ;;  %vm1001_vm14 = vcmp.eq.f32.partialorder %v2968_v50, %v2995_v8 }
 0x16b   :  { %vm1002_vm2 = vcmp.eq.f32.partialorder %v2977_v1, %v2995_v8  ;;  %vm1003_vm5 = vcmp.eq.f32.partialorder %v2983_v40, %v2995_v8  ;;  %vm1004_vm9 = vcmp.eq.f32.partialorder %v2989_v11, %v2995_v8  ;;  %v1005_v48 = vsel %vm973_vm4, %v1370_v17, 1073741824 }
 0x16c   :  { %vm965_vm7 = vcmp.lt.s32.totalorder %v963_v34, %v964_v28  ;;  %v1006_v60 = vsel %vm974_vm11, %v1373_v25, 1073741824  ;;  %v1007_v31 = vsel %vm975_vm8, %v1376_v27, 1073741824  ;;  %v1008_v47 = vsel %vm976_vm1, %v1379_v33, 1073741824 }
 0x16d   :  { %v3029_v46 = vsel %vm965_vm7, %v963_v34, %v964_v28  ;;  %vm999_vm7 = vcmp.eq.f32.partialorder %v2955_v14, %v2995_v8  ;;  %v1009_v17 = vsel %vm977_vm10, %v1382_v35, 1073741824  ;;  %v1010_v25 = vsel %vm978_vm6, %v1385_v37, 1073741824  ;;  %v3891_v34 = vld [vmem:[#allocation71_spill] sm:$0xff]  ;;  %v3892_v28 = vld [vmem:[#allocation72_spill] sm:$0xff] }
 0x16e   :  { %v967_v3 = vrot.slane %v3029_v46, 2  ;;  %v1011_v27 = vsel %vm979_vm12, %v1388_v39, 1073741824  ;;  %v1012_v33 = vsel %vm980_vm3, %v3852_v44, 1073741824  ;;  %v1013_v35 = vsel %vm981_vm0, %v3853_v41, 1073741824 }
 0x16f   :  { %vm3855_vm4 = vcmp.eq.f32.partialorder %v2817_v19, %v2995_v8  ;;  %vm3857_vm11 = vcmp.eq.f32.partialorder %v2823_v6, %v2995_v8  ;;  %vm3859_vm8 = vcmp.eq.f32.partialorder %v2837_v38, %v2995_v8  ;;  %vm3861_vm1 = vcmp.eq.f32.partialorder %v2849_v26, %v2995_v8  ;;  %v3866_v19 = vld [vmem:[#allocation54_spill] sm:$0xff]  ;;  %v3872_v26 = vld [vmem:[#allocation57_spill] sm:$0xff] }
 0x170   :  { %v1014_v37 = vsel %vm3855_vm4, %v3854_v18, 1073741824  ;;  %v1015_v39 = vsel %vm3857_vm11, %v3856_v23, 1073741824  ;;  %v1016_v54 = vsel %vm3859_vm8, %v3858_v49, 1073741824  ;;  %v1017_v13 = vsel %vm3861_vm1, %v3860_v62, 1073741824 }
 0x171   :  { %vm3863_vm10 = vcmp.eq.f32.partialorder %v2855_v57, %v2995_v8  ;;  %vm3865_vm6 = vcmp.eq.f32.partialorder %v2866_v21, %v2995_v8  ;;  %vm3867_vm12 = vcmp.eq.f32.partialorder %v2875_v52, %v2995_v8  ;;  %vm3869_vm3 = vcmp.eq.f32.partialorder %v2881_v61, %v2995_v8  ;;  %v3874_v21 = vld [vmem:[#allocation58_spill] sm:$0xff] }
 0x172   :  { %v1018_v32 = vsel %vm3863_vm10, %v3862_v30, 1073741824  ;;  %v1019_v56 = vsel %vm3865_vm6, %v3864_v4, 1073741824  ;;  %v1020_v6 = vsel %vm3867_vm12, %v3866_v19, 1073741824  ;;  %v1021_v58 = vsel %vm3869_vm3, %v3868_v5, 1073741824 }
 0x173   :  { %vm3871_vm0 = vcmp.eq.f32.partialorder %v2887_v63, %v2995_v8  ;;  %vm3873_vm4 = vcmp.eq.f32.partialorder %v2894_v2, %v2995_v8  ;;  %vm3875_vm11 = vcmp.eq.f32.partialorder %v2903_v15, %v2995_v8  ;;  %vm3877_vm8 = vcmp.eq.f32.partialorder %v2909_v55, %v2995_v8 }
 0x174   :  { %v1022_v38 = vsel %vm3871_vm0, %v3870_v7, 1073741824  ;;  %v1023_v57 = vsel %vm3873_vm4, %v3872_v26, 1073741824  ;;  %v1024_v52 = vsel %vm3875_vm11, %v3874_v21, 1073741824  ;;  %v1025_v61 = vsel %vm3877_vm8, %v3876_v36, 1073741824 }
 0x175   :  { %vm3879_vm1 = vcmp.eq.f32.partialorder %v2918_v43, %v2995_v8  ;;  %vm3881_vm10 = vcmp.eq.f32.partialorder %v2927_v20, %v2995_v8  ;;  %vm3883_vm6 = vcmp.eq.f32.partialorder %v2933_v24, %v2995_v8  ;;  %vm3885_vm12 = vcmp.eq.f32.partialorder %v2939_v12, %v2995_v8 }
 0x176   :  { %v1026_v63 = vsel %vm3879_vm1, %v3878_v9, 1073741824  ;;  %v1027_v2 = vsel %vm3881_vm10, %v3880_v22, 1073741824  ;;  %v1028_v15 = vsel %vm3883_vm6, %v3882_v51, 1073741824  ;;  %v1029_v55 = vsel %vm3885_vm12, %v3884_v53, 1073741824 }
 0x177   :  { %v1030_v43 = vsel %vm998_vm13, %v3886_v16, 1073741824  ;;  %v1031_v20 = vsel %vm999_vm7, %v3887_v29, 1073741824  ;;  %v1032_v24 = vsel %vm1000_vm15, %v3888_v42, 1073741824  ;;  %v1033_v12 = vsel %vm1001_vm14, %v3889_v10, 1073741824 }
 0x178   :  { %v1034_v0 = vsel %vm1002_vm2, %v3890_v45, 1073741824  ;;  %v1035_v14 = vsel %vm1003_vm5, %v3891_v34, 1073741824  ;;  %v1036_v59 = vsel %vm1004_vm9, %v3892_v28, 1073741824  ;;  %vm1037_vm13 = vcmp.lt.s32.totalorder %v1005_v48, %v1009_v17 }
 0x179   :  { %vm1039_vm15 = vcmp.lt.s32.totalorder %v1006_v60, %v1010_v25  ;;  %vm1041_vm7 = vcmp.lt.s32.totalorder %v1007_v31, %v1011_v27  ;;  %vm1043_vm3 = vcmp.lt.s32.totalorder %v1008_v47, %v1012_v33  ;;  %v1038_v50 = vsel %vm1037_vm13, %v1005_v48, %v1009_v17 }
 0x17a   :  { %v1040_v44 = vsel %vm1039_vm15, %v1006_v60, %v1010_v25  ;;  %v1042_v41 = vsel %vm1041_vm7, %v1007_v31, %v1011_v27  ;;  %v1044_v18 = vsel %vm1043_vm3, %v1008_v47, %v1012_v33  ;;  %vm1045_vm14 = vcmp.lt.s32.totalorder %v1038_v50, %v1013_v35 }
 0x17b   :  { %vm1047_vm2 = vcmp.lt.s32.totalorder %v1040_v44, %v1014_v37  ;;  %vm1049_vm0 = vcmp.lt.s32.totalorder %v1042_v41, %v1015_v39  ;;  %vm1051_vm4 = vcmp.lt.s32.totalorder %v1044_v18, %v1016_v54  ;;  %v1046_v1 = vsel %vm1045_vm14, %v1038_v50, %v1013_v35 }
 0x17c   :  { %v1048_v40 = vsel %vm1047_vm2, %v1040_v44, %v1014_v37  ;;  %v1050_v23 = vsel %vm1049_vm0, %v1042_v41, %v1015_v39  ;;  %v1052_v49 = vsel %vm1051_vm4, %v1044_v18, %v1016_v54  ;;  %vm1114_vm5 = vcmask 1042432  }
 0x17d   :  { %vm1053_vm11 = vcmp.lt.s32.totalorder %v1046_v1, %v1017_v13  ;;  %vm1055_vm8 = vcmp.lt.s32.totalorder %v1048_v40, %v1018_v32  ;;  %vm1057_vm9 = vcmp.lt.s32.totalorder %v1050_v23, %v1019_v56  ;;  %vm1059_vm1 = vcmp.lt.s32.totalorder %v1052_v49, %v1020_v6 }
 0x17e   :  { %v1054_v11 = vsel %vm1053_vm11, %v1046_v1, %v1017_v13  ;;  %v1056_v62 = vsel %vm1055_vm8, %v1048_v40, %v1018_v32  ;;  %v1058_v30 = vsel %vm1057_vm9, %v1050_v23, %v1019_v56  ;;  %v1060_v48 = vsel %vm1059_vm1, %v1052_v49, %v1020_v6  ;;  %v3893_v6 = vld [vmem:[#allocation38_spill] sm:$0xff] }
 0x17f   :  { %vm1061_vm10 = vcmp.lt.s32.totalorder %v1054_v11, %v1021_v58  ;;  %vm1063_vm6 = vcmp.lt.s32.totalorder %v1056_v62, %v1022_v38  ;;  %vm1065_vm12 = vcmp.lt.s32.totalorder %v1058_v30, %v1023_v57  ;;  %vm1067_vm13 = vcmp.lt.s32.totalorder %v1060_v48, %v1024_v52 }
 0x180   :  { %v1062_v60 = vsel %vm1061_vm10, %v1054_v11, %v1021_v58  ;;  %v1064_v31 = vsel %vm1063_vm6, %v1056_v62, %v1022_v38  ;;  %v1066_v47 = vsel %vm1065_vm12, %v1058_v30, %v1023_v57  ;;  %v1068_v17 = vsel %vm1067_vm13, %v1060_v48, %v1024_v52 }
 0x181   :  { %vm1069_vm15 = vcmp.lt.s32.totalorder %v1062_v60, %v1025_v61  ;;  %vm1071_vm7 = vcmp.lt.s32.totalorder %v1064_v31, %v1026_v63  ;;  %vm1073_vm3 = vcmp.lt.s32.totalorder %v1066_v47, %v1027_v2  ;;  %vm1075_vm14 = vcmp.lt.s32.totalorder %v1068_v17, %v1028_v15 }
 0x182   :  { %v1070_v25 = vsel %vm1069_vm15, %v1062_v60, %v1025_v61  ;;  %v1072_v27 = vsel %vm1071_vm7, %v1064_v31, %v1026_v63  ;;  %v1074_v33 = vsel %vm1073_vm3, %v1066_v47, %v1027_v2  ;;  %v1076_v35 = vsel %vm1075_vm14, %v1068_v17, %v1028_v15 }
 0x183   :  { %vm1077_vm2 = vcmp.lt.s32.totalorder %v1070_v25, %v1029_v55  ;;  %vm1079_vm0 = vcmp.lt.s32.totalorder %v1072_v27, %v1030_v43  ;;  %vm1081_vm4 = vcmp.lt.s32.totalorder %v1074_v33, %v1031_v20  ;;  %vm1083_vm11 = vcmp.lt.s32.totalorder %v1076_v35, %v1032_v24 }
 0x184   :  { %v1078_v37 = vsel %vm1077_vm2, %v1070_v25, %v1029_v55  ;;  %v1080_v39 = vsel %vm1079_vm0, %v1072_v27, %v1030_v43  ;;  %v1082_v54 = vsel %vm1081_vm4, %v1074_v33, %v1031_v20  ;;  %v1084_v13 = vsel %vm1083_vm11, %v1076_v35, %v1032_v24 }
 0x185   :  { %vm1085_vm8 = vcmp.lt.s32.totalorder %v1078_v37, %v1033_v12  ;;  %vm1087_vm9 = vcmp.lt.s32.totalorder %v1080_v39, %v1034_v0  ;;  %vm1089_vm1 = vcmp.lt.s32.totalorder %v1082_v54, %v1035_v14  ;;  %vm1091_vm10 = vcmp.lt.s32.totalorder %v1084_v13, %v1036_v59 }
 0x186   :  { %v1086_v32 = vsel %vm1085_vm8, %v1078_v37, %v1033_v12  ;;  %v1088_v4 = vsel %vm1087_vm9, %v1080_v39, %v1034_v0  ;;  %v1090_v56 = vsel %vm1089_vm1, %v1082_v54, %v1035_v14  ;;  %v1092_v19 = vsel %vm1091_vm10, %v1084_v13, %v1036_v59 }
 0x187   :  { %vm1093_vm6 = vcmp.lt.s32.totalorder %v1086_v32, %v1088_v4  ;;  %vm1095_vm12 = vcmp.lt.s32.totalorder %v1090_v56, %v1092_v19  ;;  %v1115_v5 = vsel %vm1114_vm5, %v3893_v6, %v2995_v8  ;;  %vm968_vm13 = vcmp.lt.s32.totalorder %v3029_v46, %v967_v3 }
 0x188   :  { %v1094_v58 = vsel %vm1093_vm6, %v1086_v32, %v1088_v4  ;;  %v1096_v7 = vsel %vm1095_vm12, %v1090_v56, %v1092_v19  ;;  %1119 = vst [vmem:[#allocation2] sm:$0xf] %v1115_v5  ;;  %v969_v57 = vsel %vm968_vm13, %v3029_v46, %v967_v3  ;;  %v3894_v46 = vld [vmem:[#allocation63_spill] sm:$0xff] }
 0x189   :  { %vm1097_vm15 = vcmp.lt.s32.totalorder %v1094_v58, %v1096_v7  ;;  %1124 = vst [vmem:[#allocation7] sm:$0xf] %v1115_v5  ;;  %v970_v21 = vrot.slane %v969_v57, 1 }
 0x18a   :  { %v1098_v38 = vsel %vm1097_vm15, %v1094_v58, %v1096_v7  ;;  %1136 = dma.vmem_to_hbm [thread:$0]  %s1132_s16, 64, %s1134_s19, [#allocation6]  }
 0x18b   :  { %v1099_v26 = vrot.slane %v1098_v38, 4  ;;  %vm971_vm14 = vcmp.lt.s32.totalorder %v969_v57, %v970_v21 }
 0x18c   :  { %v972_v9 = vsel %vm971_vm14, %v969_v57, %v970_v21 }
 0x18d   :  { %vm1100_vm7 = vcmp.lt.s32.totalorder %v1098_v38, %v1099_v26 }
 0x18e   :  { %v1101_v8 = vsel %vm1100_vm7, %v1098_v38, %v1099_v26 }
 0x18f   :  { %v1102_v52 = vrot.slane %v1101_v8, 2 }
 0x191   :  { %vm1103_vm3 = vcmp.lt.s32.totalorder %v1101_v8, %v1102_v52 }
 0x192   :  { %v1104_v36 = vsel %vm1103_vm3, %v1101_v8, %v1102_v52 }
 0x193   :  { %v1105_v61 = vrot.slane %v1104_v36, 1 }
 0x195   :  { %vm1106_vm2 = vcmp.lt.s32.totalorder %v1104_v36, %v1105_v61 }
 0x196   :  { %v1107_v63 = vsel %vm1106_vm2, %v1104_v36, %v1105_v61 }
 0x197   :  { %vm1108_vm0 = vcmp.lt.s32.totalorder %v972_v9, %v1107_v63 }
 0x198   :  { %v1109_v22 = vsel %vm1108_vm0, %v972_v9, %v1107_v63 }
 0x199   :  { %v1118_v3 = vsel %vm1114_vm5, %v3894_v46, %v1109_v22 }
 0x19a   :  { %1120 = vst [vmem:[#allocation3] sm:$0xf] %v1118_v3 }
 0x19b   :  { %1125 = vst [vmem:[#allocation8] sm:$0xf] %v1118_v3 }
 0x19c   :  { %1147 = dma.vmem_to_hbm [thread:$0]  %s1143_s20, 64, %s1145_s23, [#allocation9]  }
 0x19d   :  { %1241 = dma.done.wait [#allocation6], 64  }
 0x19e   :  { %1242 = vsyncadd [#allocation6], 4294967232 }
 0x19f   :  { %1243 = dma.done.wait [#allocation9], 64  }
 0x1a0   :  { %1244 = vsyncadd [#allocation9], 4294967232 }
 0x1a1   :  { %1156 = vsyncpa [#allocation5], 1 }
 0x1a2   :  { %1157 = vsyncpa [#allocation6], 1 }
 0x1a3   :  { %1158 = vsyncpa [#allocation9], 1 }

</bundles_post_ra>
